<compile_context>
chip_gen: v7x
topology: tpu7x:2x2x1
jax: 0.10.0
libtpu: 0.0.40
codegen_flags: <defaults>
</compile_context>

<pallas_src>
import functools

import jax
import jax.numpy as jnp
import numpy as np
from jax import lax
from jax.experimental import pallas as pl
from jax.experimental.pallas import tpu as pltpu


# ----------------------------------------------------------------------------
# Fused Pallas kernel: all LSTM layers + Linear head + [:, 2:, :] slice.
# ----------------------------------------------------------------------------
def _fused_lstm_head_kernel(num_layers, x_ref, *refs):
    """Single-invocation kernel (grid=()), everything resident in VMEM.

    x_ref : (T, B, D) time-major input.
    refs  : [w_in_l (D_l, 4H), w_h_l (H, 4H), b_l (1, 4H)] * num_layers,
            w_fc (H, O), b_fc (1, O), out_ref (T-2, B, O).
    """
    out_ref = refs[-1]
    w_fc = refs[3 * num_layers][...]
    b_fc = refs[3 * num_layers + 1][...]
    w_in = [refs[3 * l + 0][...] for l in range(num_layers)]
    w_h = [refs[3 * l + 1][...] for l in range(num_layers)]
    bias = [refs[3 * l + 2][...] for l in range(num_layers)]

    T, B, _ = x_ref.shape
    H = w_h[0].shape[0]

    # Recurrent state lives in vregs (no scratch needed: loop is unrolled).
    h = [jnp.zeros((B, H), jnp.float32) for _ in range(num_layers)]
    c = [jnp.zeros((B, H), jnp.float32) for _ in range(num_layers)]

    def lstm_cell(inp, h_prev, c_prev, w_i, w_r, b):
        # PyTorch gate order i, f, g, o; combined bias b = b_ih + b_hh.
        gates = (
            jnp.dot(inp, w_i, preferred_element_type=jnp.float32)
            + jnp.dot(h_prev, w_r, preferred_element_type=jnp.float32)
            + b
        )
        i_g = jax.nn.sigmoid(gates[:, 0 * H:1 * H])
        f_g = jax.nn.sigmoid(gates[:, 1 * H:2 * H])
        g_g = jnp.tanh(gates[:, 2 * H:3 * H])
        o_g = jax.nn.sigmoid(gates[:, 3 * H:4 * H])
        c_new = f_g * c_prev + i_g * g_g
        h_new = o_g * jnp.tanh(c_new)
        return h_new, c_new

    # Statically unrolled time recurrence (T is small); the whole body is one
    # basic block so the LLO scheduler overlaps input-projection / head matmuls
    # with the serial h -> h dependency chain.
    # TODO(synk): for long sequences switch to lax.fori_loop with (h, c) carries
    # (x_ref[t] / out_ref[t-2] also support dynamic leading-axis indices).
    for t in range(T):
        inp = x_ref[t]                      # (B, D) leading-axis slice
        for l in range(num_layers):
            h[l], c[l] = lstm_cell(inp, h[l], c[l], w_in[l], w_h[l], bias[l])
            inp = h[l]
        if t >= 2:                          # fused out[:, 2:, :]
            y = jnp.dot(inp, w_fc, preferred_element_type=jnp.float32) + b_fc
            out_ref[t - 2] = y.astype(out_ref.dtype)


# ----------------------------------------------------------------------------
# Wrapper
# ----------------------------------------------------------------------------
def _lstm_baseline_pallas(x, lstm_params, fc_w, fc_b):
    B, T, _ = x.shape
    num_layers = len(lstm_params)
    out_dim = fc_w.shape[0]

    # Sub-KB layout op: time-major so all per-step indexing is leading-axis.
    x_tm = jnp.transpose(x, (1, 0, 2))      # (T, B, D)

    args = [x_tm]
    for wih, whh, b_ih, b_hh in lstm_params:
        args.append(wih.T)                  # (D_l, 4H)
        args.append(whh.T)                  # (H, 4H)
        args.append((b_ih + b_hh)[None, :]) # (1, 4H) fused bias
    args.append(fc_w.T)                     # (H, O)
    args.append(fc_b[None, :])              # (1, O)

    vmem = pl.BlockSpec(memory_space=pltpu.MemorySpace.VMEM)
    out_tm = pl.pallas_call(
        functools.partial(_fused_lstm_head_kernel, num_layers),
        out_shape=jax.ShapeDtypeStruct((T - 2, B, out_dim), jnp.float32),
        in_specs=[vmem] * len(args),
        out_specs=vmem,
    )(*args)                                # (T-2, B, O), single HBM writeback
    return jnp.transpose(out_tm, (1, 0, 2)) # (B, T-2, O)


@jax.jit
def lstm_baseline_forward(x, lstm_params, fc_w, fc_b):
    """Equivalent of LSTMBaseline.forward."""
    if x.ndim == 2:                         # mirror the PyTorch unsqueeze(0)
        x = x[None]
    return _lstm_baseline_pallas(x, lstm_params, fc_w, fc_b)


# ----------------------------------------------------------------------------
# Pure-JAX reference (mirrors torch.nn.LSTM + Linear semantics)
# ----------------------------------------------------------------------------
def lstm_baseline_ref(x, lstm_params, fc_w, fc_b):
    B, T, _ = x.shape
    h_seq = x
    for wih, whh, b_ih, b_hh in lstm_params:
        H = whh.shape[1]

        def step(carry, x_t):
            h, c = carry
            gates = x_t @ wih.T + h @ whh.T + b_ih + b_hh
            i = jax.nn.sigmoid(gates[:, 0 * H:1 * H])
            f = jax.nn.sigmoid(gates[:, 1 * H:2 * H])
            g = jnp.tanh(gates[:, 2 * H:3 * H])
            o = jax.nn.sigmoid(gates[:, 3 * H:4 * H])
            c = f * c + i * g
            h = o * jnp.tanh(c)
            return (h, c), h

        xs = jnp.transpose(h_seq, (1, 0, 2))
        init = (jnp.zeros((B, H), jnp.float32), jnp.zeros((B, H), jnp.float32))
        _, ys = lax.scan(step, init, xs)
        h_seq = jnp.transpose(ys, (1, 0, 2))
    out = h_seq @ fc_w.T + fc_b
    return out[:, 2:, :]


# ----------------------------------------------------------------------------
# Deterministic parameter init + run
# ----------------------------------------------------------------------------
def init_params(key, input_dim, hidden_dims, output_dim):
    H = hidden_dims[0]
    num_layers = len(hidden_dims)
    k = 1.0 / np.sqrt(H)
    lstm_params = []
    for l in range(num_layers):
        d_in = input_dim if l == 0 else H
        key, k1, k2, k3, k4 = jax.random.split(key, 5)
        wih = jax.random.uniform(k1, (4 * H, d_in), jnp.float32, -k, k)
        whh = jax.random.uniform(k2, (4 * H, H), jnp.float32, -k, k)
        b_ih = jax.random.uniform(k3, (4 * H,), jnp.float32, -k, k)
        b_hh = jax.random.uniform(k4, (4 * H,), jnp.float32, -k, k)
        lstm_params.append((wih, whh, b_ih, b_hh))
    key, k5, k6 = jax.random.split(key, 3)
    kf = 1.0 / np.sqrt(H)
    fc_w = jax.random.uniform(k5, (output_dim, H), jnp.float32, -kf, kf)
    fc_b = jax.random.uniform(k6, (output_dim,), jnp.float32, -kf, kf)
    return lstm_params, fc_w, fc_b


if __name__ == "__main__":
    input_dim = 8
    hidden_dims = [32, 32]   # 2-layer LSTM, hidden 32
    output_dim = 16
    B, T = 2, 8

    key = jax.random.PRNGKey(0)
    key, kx = jax.random.split(key)
    x = jax.random.normal(kx, (B, T, input_dim), jnp.float32)

    lstm_params, fc_w, fc_b = init_params(key, input_dim, hidden_dims, output_dim)

    out = lstm_baseline_forward(x, lstm_params, fc_w, fc_b)
    out = jax.block_until_ready(out)

    ref = lstm_baseline_ref(x, lstm_params, fc_w, fc_b)
    assert out.shape == (B, T - 2, output_dim), out.shape
    if not np.allclose(np.asarray(out), np.asarray(ref), rtol=2e-2, atol=2e-3):
        raise AssertionError("Pallas LSTM output mismatch vs reference")

    print("KERNEL_OK")
</pallas_src>

<mosaic_0001>
module attributes {stable_mosaic.version = 11 : i64} {
  func.func @_fused_lstm_head_kernel(%arg0: memref<8x2x8xf32, #tpu.memory_space<vmem>>, %arg1: memref<8x128xf32, #tpu.memory_space<vmem>>, %arg2: memref<32x128xf32, #tpu.memory_space<vmem>>, %arg3: memref<1x128xf32, #tpu.memory_space<vmem>>, %arg4: memref<32x128xf32, #tpu.memory_space<vmem>>, %arg5: memref<32x128xf32, #tpu.memory_space<vmem>>, %arg6: memref<1x128xf32, #tpu.memory_space<vmem>>, %arg7: memref<32x16xf32, #tpu.memory_space<vmem>>, %arg8: memref<1x16xf32, #tpu.memory_space<vmem>>, %arg9: memref<6x2x16xf32, #tpu.memory_space<vmem>>) attributes {dimension_semantics = [], scalar_prefetch = 0 : i64, scratch_operands = 0 : i64, tpu.core_type = #tpu.core_type<tc>} {
    %c0 = arith.constant 0 : index
    %c0_0 = arith.constant 0 : index
    %0 = vector.load %arg7[%c0, %c0_0] : memref<32x16xf32, #tpu.memory_space<vmem>>, vector<32x16xf32>
    %c0_1 = arith.constant 0 : index
    %c0_2 = arith.constant 0 : index
    %1 = vector.load %arg8[%c0_1, %c0_2] : memref<1x16xf32, #tpu.memory_space<vmem>>, vector<1x16xf32>
    %c0_3 = arith.constant 0 : index
    %c0_4 = arith.constant 0 : index
    %2 = vector.load %arg1[%c0_3, %c0_4] : memref<8x128xf32, #tpu.memory_space<vmem>>, vector<8x128xf32>
    %c0_5 = arith.constant 0 : index
    %c0_6 = arith.constant 0 : index
    %3 = vector.load %arg4[%c0_5, %c0_6] : memref<32x128xf32, #tpu.memory_space<vmem>>, vector<32x128xf32>
    %c0_7 = arith.constant 0 : index
    %c0_8 = arith.constant 0 : index
    %4 = vector.load %arg2[%c0_7, %c0_8] : memref<32x128xf32, #tpu.memory_space<vmem>>, vector<32x128xf32>
    %c0_9 = arith.constant 0 : index
    %c0_10 = arith.constant 0 : index
    %5 = vector.load %arg5[%c0_9, %c0_10] : memref<32x128xf32, #tpu.memory_space<vmem>>, vector<32x128xf32>
    %c0_11 = arith.constant 0 : index
    %c0_12 = arith.constant 0 : index
    %6 = vector.load %arg3[%c0_11, %c0_12] : memref<1x128xf32, #tpu.memory_space<vmem>>, vector<1x128xf32>
    %c0_13 = arith.constant 0 : index
    %c0_14 = arith.constant 0 : index
    %7 = vector.load %arg6[%c0_13, %c0_14] : memref<1x128xf32, #tpu.memory_space<vmem>>, vector<1x128xf32>
    %cst = arith.constant 0.000000e+00 : f32
    %8 = vector.broadcast %cst : f32 to vector<2x32xf32>
    %cst_15 = arith.constant 0.000000e+00 : f32
    %9 = vector.broadcast %cst_15 : f32 to vector<2x32xf32>
    %cst_16 = arith.constant 0.000000e+00 : f32
    %10 = vector.broadcast %cst_16 : f32 to vector<2x32xf32>
    %cst_17 = arith.constant 0.000000e+00 : f32
    %11 = vector.broadcast %cst_17 : f32 to vector<2x32xf32>
    %c0_18 = arith.constant 0 : index
    %c0_19 = arith.constant 0 : index
    %c0_20 = arith.constant 0 : index
    %12 = vector.load %arg0[%c0_18, %c0_19, %c0_20] : memref<8x2x8xf32, #tpu.memory_space<vmem>>, vector<1x2x8xf32>
    %13 = vector.shape_cast %12 : vector<1x2x8xf32> to vector<2x8xf32>
    %cst_21 = arith.constant dense<0.000000e+00> : vector<2x128xf32>
    %14 = tpu.matmul %13, %2, %cst_21 {dimension_numbers = #tpu.dot_dimension_numbers<[1], [0], [0], [1], [0, 0, 1, 1], [], []>} : vector<2x8xf32>, vector<8x128xf32>, vector<2x128xf32> -> vector<2x128xf32>
    %cst_22 = arith.constant dense<0.000000e+00> : vector<2x128xf32>
    %15 = tpu.matmul %8, %4, %cst_22 {dimension_numbers = #tpu.dot_dimension_numbers<[1], [0], [0], [1], [0, 0, 1, 1], [], []>} : vector<2x32xf32>, vector<32x128xf32>, vector<2x128xf32> -> vector<2x128xf32>
    %16 = arith.addf %14, %15 : vector<2x128xf32>
    %17 = vector.broadcast %6 : vector<1x128xf32> to vector<2x128xf32>
    %18 = arith.addf %16, %17 : vector<2x128xf32>
    %19 = vector.extract_strided_slice %18 {offsets = [0, 0], sizes = [2, 32], strides = [1, 1]} : vector<2x128xf32> to vector<2x32xf32>
    %20 = arith.negf %19 : vector<2x32xf32>
    %21 = math.exp %20 : vector<2x32xf32>
    %cst_23 = arith.constant 1.000000e+00 : f32
    %22 = vector.broadcast %cst_23 : f32 to vector<2x32xf32>
    %23 = arith.addf %22, %21 : vector<2x32xf32>
    %24 = arith.divf %22, %23 : vector<2x32xf32>
    %25 = vector.extract_strided_slice %18 {offsets = [0, 32], sizes = [2, 32], strides = [1, 1]} : vector<2x128xf32> to vector<2x32xf32>
    %26 = arith.negf %25 : vector<2x32xf32>
    %27 = math.exp %26 : vector<2x32xf32>
    %cst_24 = arith.constant 1.000000e+00 : f32
    %28 = vector.broadcast %cst_24 : f32 to vector<2x32xf32>
    %29 = arith.addf %28, %27 : vector<2x32xf32>
    %30 = arith.divf %28, %29 : vector<2x32xf32>
    %31 = vector.extract_strided_slice %18 {offsets = [0, 64], sizes = [2, 32], strides = [1, 1]} : vector<2x128xf32> to vector<2x32xf32>
    %32 = math.tanh %31 : vector<2x32xf32>
    %33 = vector.extract_strided_slice %18 {offsets = [0, 96], sizes = [2, 32], strides = [1, 1]} : vector<2x128xf32> to vector<2x32xf32>
    %34 = arith.negf %33 : vector<2x32xf32>
    %35 = math.exp %34 : vector<2x32xf32>
    %cst_25 = arith.constant 1.000000e+00 : f32
    %36 = vector.broadcast %cst_25 : f32 to vector<2x32xf32>
    %37 = arith.addf %36, %35 : vector<2x32xf32>
    %38 = arith.divf %36, %37 : vector<2x32xf32>
    %39 = arith.mulf %30, %10 : vector<2x32xf32>
    %40 = arith.mulf %24, %32 : vector<2x32xf32>
    %41 = arith.addf %39, %40 : vector<2x32xf32>
    %42 = math.tanh %41 : vector<2x32xf32>
    %43 = arith.mulf %38, %42 : vector<2x32xf32>
    %cst_26 = arith.constant dense<0.000000e+00> : vector<2x128xf32>
    %44 = tpu.matmul %43, %3, %cst_26 {dimension_numbers = #tpu.dot_dimension_numbers<[1], [0], [0], [1], [0, 0, 1, 1], [], []>} : vector<2x32xf32>, vector<32x128xf32>, vector<2x128xf32> -> vector<2x128xf32>
    %cst_27 = arith.constant dense<0.000000e+00> : vector<2x128xf32>
    %45 = tpu.matmul %9, %5, %cst_27 {dimension_numbers = #tpu.dot_dimension_numbers<[1], [0], [0], [1], [0, 0, 1, 1], [], []>} : vector<2x32xf32>, vector<32x128xf32>, vector<2x128xf32> -> vector<2x128xf32>
    %46 = arith.addf %44, %45 : vector<2x128xf32>
    %47 = vector.broadcast %7 : vector<1x128xf32> to vector<2x128xf32>
    %48 = arith.addf %46, %47 : vector<2x128xf32>
    %49 = vector.extract_strided_slice %48 {offsets = [0, 0], sizes = [2, 32], strides = [1, 1]} : vector<2x128xf32> to vector<2x32xf32>
    %50 = arith.negf %49 : vector<2x32xf32>
    %51 = math.exp %50 : vector<2x32xf32>
    %cst_28 = arith.constant 1.000000e+00 : f32
    %52 = vector.broadcast %cst_28 : f32 to vector<2x32xf32>
    %53 = arith.addf %52, %51 : vector<2x32xf32>
    %54 = arith.divf %52, %53 : vector<2x32xf32>
    %55 = vector.extract_strided_slice %48 {offsets = [0, 32], sizes = [2, 32], strides = [1, 1]} : vector<2x128xf32> to vector<2x32xf32>
    %56 = arith.negf %55 : vector<2x32xf32>
    %57 = math.exp %56 : vector<2x32xf32>
    %cst_29 = arith.constant 1.000000e+00 : f32
    %58 = vector.broadcast %cst_29 : f32 to vector<2x32xf32>
    %59 = arith.addf %58, %57 : vector<2x32xf32>
    %60 = arith.divf %58, %59 : vector<2x32xf32>
    %61 = vector.extract_strided_slice %48 {offsets = [0, 64], sizes = [2, 32], strides = [1, 1]} : vector<2x128xf32> to vector<2x32xf32>
    %62 = math.tanh %61 : vector<2x32xf32>
    %63 = vector.extract_strided_slice %48 {offsets = [0, 96], sizes = [2, 32], strides = [1, 1]} : vector<2x128xf32> to vector<2x32xf32>
    %64 = arith.negf %63 : vector<2x32xf32>
    %65 = math.exp %64 : vector<2x32xf32>
    %cst_30 = arith.constant 1.000000e+00 : f32
    %66 = vector.broadcast %cst_30 : f32 to vector<2x32xf32>
    %67 = arith.addf %66, %65 : vector<2x32xf32>
    %68 = arith.divf %66, %67 : vector<2x32xf32>
    %69 = arith.mulf %60, %11 : vector<2x32xf32>
    %70 = arith.mulf %54, %62 : vector<2x32xf32>
    %71 = arith.addf %69, %70 : vector<2x32xf32>
    %72 = math.tanh %71 : vector<2x32xf32>
    %73 = arith.mulf %68, %72 : vector<2x32xf32>
    %c1 = arith.constant 1 : index
    %c0_31 = arith.constant 0 : index
    %c0_32 = arith.constant 0 : index
    %74 = vector.load %arg0[%c1, %c0_31, %c0_32] : memref<8x2x8xf32, #tpu.memory_space<vmem>>, vector<1x2x8xf32>
    %75 = vector.shape_cast %74 : vector<1x2x8xf32> to vector<2x8xf32>
    %cst_33 = arith.constant dense<0.000000e+00> : vector<2x128xf32>
    %76 = tpu.matmul %75, %2, %cst_33 {dimension_numbers = #tpu.dot_dimension_numbers<[1], [0], [0], [1], [0, 0, 1, 1], [], []>} : vector<2x8xf32>, vector<8x128xf32>, vector<2x128xf32> -> vector<2x128xf32>
    %cst_34 = arith.constant dense<0.000000e+00> : vector<2x128xf32>
    %77 = tpu.matmul %43, %4, %cst_34 {dimension_numbers = #tpu.dot_dimension_numbers<[1], [0], [0], [1], [0, 0, 1, 1], [], []>} : vector<2x32xf32>, vector<32x128xf32>, vector<2x128xf32> -> vector<2x128xf32>
    %78 = arith.addf %76, %77 : vector<2x128xf32>
    %79 = vector.broadcast %6 : vector<1x128xf32> to vector<2x128xf32>
    %80 = arith.addf %78, %79 : vector<2x128xf32>
    %81 = vector.extract_strided_slice %80 {offsets = [0, 0], sizes = [2, 32], strides = [1, 1]} : vector<2x128xf32> to vector<2x32xf32>
    %82 = arith.negf %81 : vector<2x32xf32>
    %83 = math.exp %82 : vector<2x32xf32>
    %cst_35 = arith.constant 1.000000e+00 : f32
    %84 = vector.broadcast %cst_35 : f32 to vector<2x32xf32>
    %85 = arith.addf %84, %83 : vector<2x32xf32>
    %86 = arith.divf %84, %85 : vector<2x32xf32>
    %87 = vector.extract_strided_slice %80 {offsets = [0, 32], sizes = [2, 32], strides = [1, 1]} : vector<2x128xf32> to vector<2x32xf32>
    %88 = arith.negf %87 : vector<2x32xf32>
    %89 = math.exp %88 : vector<2x32xf32>
    %cst_36 = arith.constant 1.000000e+00 : f32
    %90 = vector.broadcast %cst_36 : f32 to vector<2x32xf32>
    %91 = arith.addf %90, %89 : vector<2x32xf32>
    %92 = arith.divf %90, %91 : vector<2x32xf32>
    %93 = vector.extract_strided_slice %80 {offsets = [0, 64], sizes = [2, 32], strides = [1, 1]} : vector<2x128xf32> to vector<2x32xf32>
    %94 = math.tanh %93 : vector<2x32xf32>
    %95 = vector.extract_strided_slice %80 {offsets = [0, 96], sizes = [2, 32], strides = [1, 1]} : vector<2x128xf32> to vector<2x32xf32>
    %96 = arith.negf %95 : vector<2x32xf32>
    %97 = math.exp %96 : vector<2x32xf32>
    %cst_37 = arith.constant 1.000000e+00 : f32
    %98 = vector.broadcast %cst_37 : f32 to vector<2x32xf32>
    %99 = arith.addf %98, %97 : vector<2x32xf32>
    %100 = arith.divf %98, %99 : vector<2x32xf32>
    %101 = arith.mulf %92, %41 : vector<2x32xf32>
    %102 = arith.mulf %86, %94 : vector<2x32xf32>
    %103 = arith.addf %101, %102 : vector<2x32xf32>
    %104 = math.tanh %103 : vector<2x32xf32>
    %105 = arith.mulf %100, %104 : vector<2x32xf32>
    %cst_38 = arith.constant dense<0.000000e+00> : vector<2x128xf32>
    %106 = tpu.matmul %105, %3, %cst_38 {dimension_numbers = #tpu.dot_dimension_numbers<[1], [0], [0], [1], [0, 0, 1, 1], [], []>} : vector<2x32xf32>, vector<32x128xf32>, vector<2x128xf32> -> vector<2x128xf32>
    %cst_39 = arith.constant dense<0.000000e+00> : vector<2x128xf32>
    %107 = tpu.matmul %73, %5, %cst_39 {dimension_numbers = #tpu.dot_dimension_numbers<[1], [0], [0], [1], [0, 0, 1, 1], [], []>} : vector<2x32xf32>, vector<32x128xf32>, vector<2x128xf32> -> vector<2x128xf32>
    %108 = arith.addf %106, %107 : vector<2x128xf32>
    %109 = vector.broadcast %7 : vector<1x128xf32> to vector<2x128xf32>
    %110 = arith.addf %108, %109 : vector<2x128xf32>
    %111 = vector.extract_strided_slice %110 {offsets = [0, 0], sizes = [2, 32], strides = [1, 1]} : vector<2x128xf32> to vector<2x32xf32>
    %112 = arith.negf %111 : vector<2x32xf32>
    %113 = math.exp %112 : vector<2x32xf32>
    %cst_40 = arith.constant 1.000000e+00 : f32
    %114 = vector.broadcast %cst_40 : f32 to vector<2x32xf32>
    %115 = arith.addf %114, %113 : vector<2x32xf32>
    %116 = arith.divf %114, %115 : vector<2x32xf32>
    %117 = vector.extract_strided_slice %110 {offsets = [0, 32], sizes = [2, 32], strides = [1, 1]} : vector<2x128xf32> to vector<2x32xf32>
    %118 = arith.negf %117 : vector<2x32xf32>
    %119 = math.exp %118 : vector<2x32xf32>
    %cst_41 = arith.constant 1.000000e+00 : f32
    %120 = vector.broadcast %cst_41 : f32 to vector<2x32xf32>
    %121 = arith.addf %120, %119 : vector<2x32xf32>
    %122 = arith.divf %120, %121 : vector<2x32xf32>
    %123 = vector.extract_strided_slice %110 {offsets = [0, 64], sizes = [2, 32], strides = [1, 1]} : vector<2x128xf32> to vector<2x32xf32>
    %124 = math.tanh %123 : vector<2x32xf32>
    %125 = vector.extract_strided_slice %110 {offsets = [0, 96], sizes = [2, 32], strides = [1, 1]} : vector<2x128xf32> to vector<2x32xf32>
    %126 = arith.negf %125 : vector<2x32xf32>
    %127 = math.exp %126 : vector<2x32xf32>
    %cst_42 = arith.constant 1.000000e+00 : f32
    %128 = vector.broadcast %cst_42 : f32 to vector<2x32xf32>
    %129 = arith.addf %128, %127 : vector<2x32xf32>
    %130 = arith.divf %128, %129 : vector<2x32xf32>
    %131 = arith.mulf %122, %71 : vector<2x32xf32>
    %132 = arith.mulf %116, %124 : vector<2x32xf32>
    %133 = arith.addf %131, %132 : vector<2x32xf32>
    %134 = math.tanh %133 : vector<2x32xf32>
    %135 = arith.mulf %130, %134 : vector<2x32xf32>
    %c2 = arith.constant 2 : index
    %c0_43 = arith.constant 0 : index
    %c0_44 = arith.constant 0 : index
    %136 = vector.load %arg0[%c2, %c0_43, %c0_44] : memref<8x2x8xf32, #tpu.memory_space<vmem>>, vector<1x2x8xf32>
    %137 = vector.shape_cast %136 : vector<1x2x8xf32> to vector<2x8xf32>
    %cst_45 = arith.constant dense<0.000000e+00> : vector<2x128xf32>
    %138 = tpu.matmul %137, %2, %cst_45 {dimension_numbers = #tpu.dot_dimension_numbers<[1], [0], [0], [1], [0, 0, 1, 1], [], []>} : vector<2x8xf32>, vector<8x128xf32>, vector<2x128xf32> -> vector<2x128xf32>
    %cst_46 = arith.constant dense<0.000000e+00> : vector<2x128xf32>
    %139 = tpu.matmul %105, %4, %cst_46 {dimension_numbers = #tpu.dot_dimension_numbers<[1], [0], [0], [1], [0, 0, 1, 1], [], []>} : vector<2x32xf32>, vector<32x128xf32>, vector<2x128xf32> -> vector<2x128xf32>
    %140 = arith.addf %138, %139 : vector<2x128xf32>
    %141 = vector.broadcast %6 : vector<1x128xf32> to vector<2x128xf32>
    %142 = arith.addf %140, %141 : vector<2x128xf32>
    %143 = vector.extract_strided_slice %142 {offsets = [0, 0], sizes = [2, 32], strides = [1, 1]} : vector<2x128xf32> to vector<2x32xf32>
    %144 = arith.negf %143 : vector<2x32xf32>
    %145 = math.exp %144 : vector<2x32xf32>
    %cst_47 = arith.constant 1.000000e+00 : f32
    %146 = vector.broadcast %cst_47 : f32 to vector<2x32xf32>
    %147 = arith.addf %146, %145 : vector<2x32xf32>
    %148 = arith.divf %146, %147 : vector<2x32xf32>
    %149 = vector.extract_strided_slice %142 {offsets = [0, 32], sizes = [2, 32], strides = [1, 1]} : vector<2x128xf32> to vector<2x32xf32>
    %150 = arith.negf %149 : vector<2x32xf32>
    %151 = math.exp %150 : vector<2x32xf32>
    %cst_48 = arith.constant 1.000000e+00 : f32
    %152 = vector.broadcast %cst_48 : f32 to vector<2x32xf32>
    %153 = arith.addf %152, %151 : vector<2x32xf32>
    %154 = arith.divf %152, %153 : vector<2x32xf32>
    %155 = vector.extract_strided_slice %142 {offsets = [0, 64], sizes = [2, 32], strides = [1, 1]} : vector<2x128xf32> to vector<2x32xf32>
    %156 = math.tanh %155 : vector<2x32xf32>
    %157 = vector.extract_strided_slice %142 {offsets = [0, 96], sizes = [2, 32], strides = [1, 1]} : vector<2x128xf32> to vector<2x32xf32>
    %158 = arith.negf %157 : vector<2x32xf32>
    %159 = math.exp %158 : vector<2x32xf32>
    %cst_49 = arith.constant 1.000000e+00 : f32
    %160 = vector.broadcast %cst_49 : f32 to vector<2x32xf32>
    %161 = arith.addf %160, %159 : vector<2x32xf32>
    %162 = arith.divf %160, %161 : vector<2x32xf32>
    %163 = arith.mulf %154, %103 : vector<2x32xf32>
    %164 = arith.mulf %148, %156 : vector<2x32xf32>
    %165 = arith.addf %163, %164 : vector<2x32xf32>
    %166 = math.tanh %165 : vector<2x32xf32>
    %167 = arith.mulf %162, %166 : vector<2x32xf32>
    %cst_50 = arith.constant dense<0.000000e+00> : vector<2x128xf32>
    %168 = tpu.matmul %167, %3, %cst_50 {dimension_numbers = #tpu.dot_dimension_numbers<[1], [0], [0], [1], [0, 0, 1, 1], [], []>} : vector<2x32xf32>, vector<32x128xf32>, vector<2x128xf32> -> vector<2x128xf32>
    %cst_51 = arith.constant dense<0.000000e+00> : vector<2x128xf32>
    %169 = tpu.matmul %135, %5, %cst_51 {dimension_numbers = #tpu.dot_dimension_numbers<[1], [0], [0], [1], [0, 0, 1, 1], [], []>} : vector<2x32xf32>, vector<32x128xf32>, vector<2x128xf32> -> vector<2x128xf32>
    %170 = arith.addf %168, %169 : vector<2x128xf32>
    %171 = vector.broadcast %7 : vector<1x128xf32> to vector<2x128xf32>
    %172 = arith.addf %170, %171 : vector<2x128xf32>
    %173 = vector.extract_strided_slice %172 {offsets = [0, 0], sizes = [2, 32], strides = [1, 1]} : vector<2x128xf32> to vector<2x32xf32>
    %174 = arith.negf %173 : vector<2x32xf32>
    %175 = math.exp %174 : vector<2x32xf32>
    %cst_52 = arith.constant 1.000000e+00 : f32
    %176 = vector.broadcast %cst_52 : f32 to vector<2x32xf32>
    %177 = arith.addf %176, %175 : vector<2x32xf32>
    %178 = arith.divf %176, %177 : vector<2x32xf32>
    %179 = vector.extract_strided_slice %172 {offsets = [0, 32], sizes = [2, 32], strides = [1, 1]} : vector<2x128xf32> to vector<2x32xf32>
    %180 = arith.negf %179 : vector<2x32xf32>
    %181 = math.exp %180 : vector<2x32xf32>
    %cst_53 = arith.constant 1.000000e+00 : f32
    %182 = vector.broadcast %cst_53 : f32 to vector<2x32xf32>
    %183 = arith.addf %182, %181 : vector<2x32xf32>
    %184 = arith.divf %182, %183 : vector<2x32xf32>
    %185 = vector.extract_strided_slice %172 {offsets = [0, 64], sizes = [2, 32], strides = [1, 1]} : vector<2x128xf32> to vector<2x32xf32>
    %186 = math.tanh %185 : vector<2x32xf32>
    %187 = vector.extract_strided_slice %172 {offsets = [0, 96], sizes = [2, 32], strides = [1, 1]} : vector<2x128xf32> to vector<2x32xf32>
    %188 = arith.negf %187 : vector<2x32xf32>
    %189 = math.exp %188 : vector<2x32xf32>
    %cst_54 = arith.constant 1.000000e+00 : f32
    %190 = vector.broadcast %cst_54 : f32 to vector<2x32xf32>
    %191 = arith.addf %190, %189 : vector<2x32xf32>
    %192 = arith.divf %190, %191 : vector<2x32xf32>
    %193 = arith.mulf %184, %133 : vector<2x32xf32>
    %194 = arith.mulf %178, %186 : vector<2x32xf32>
    %195 = arith.addf %193, %194 : vector<2x32xf32>
    %196 = math.tanh %195 : vector<2x32xf32>
    %197 = arith.mulf %192, %196 : vector<2x32xf32>
    %cst_55 = arith.constant dense<0.000000e+00> : vector<2x16xf32>
    %198 = tpu.matmul %197, %0, %cst_55 {dimension_numbers = #tpu.dot_dimension_numbers<[1], [0], [0], [1], [0, 0, 1, 1], [], []>} : vector<2x32xf32>, vector<32x16xf32>, vector<2x16xf32> -> vector<2x16xf32>
    %199 = vector.broadcast %1 : vector<1x16xf32> to vector<2x16xf32>
    %200 = arith.addf %198, %199 : vector<2x16xf32>
    %c0_56 = arith.constant 0 : index
    %c0_57 = arith.constant 0 : index
    %c0_58 = arith.constant 0 : index
    %201 = vector.load %arg9[%c0_56, %c0_57, %c0_58] : memref<6x2x16xf32, #tpu.memory_space<vmem>>, vector<1x2x16xf32>
    %202 = vector.shape_cast %201 : vector<1x2x16xf32> to vector<2x16xf32>
    %203 = vector.shape_cast %200 : vector<2x16xf32> to vector<1x2x16xf32>
    tpu.vector_store %arg9[%c0_56, %c0_57, %c0_58], %203 {strides = array<i32>} : memref<6x2x16xf32, #tpu.memory_space<vmem>>, vector<1x2x16xf32>,
    %c3 = arith.constant 3 : index
    %c0_59 = arith.constant 0 : index
    %c0_60 = arith.constant 0 : index
    %204 = vector.load %arg0[%c3, %c0_59, %c0_60] : memref<8x2x8xf32, #tpu.memory_space<vmem>>, vector<1x2x8xf32>
    %205 = vector.shape_cast %204 : vector<1x2x8xf32> to vector<2x8xf32>
    %cst_61 = arith.constant dense<0.000000e+00> : vector<2x128xf32>
    %206 = tpu.matmul %205, %2, %cst_61 {dimension_numbers = #tpu.dot_dimension_numbers<[1], [0], [0], [1], [0, 0, 1, 1], [], []>} : vector<2x8xf32>, vector<8x128xf32>, vector<2x128xf32> -> vector<2x128xf32>
    %cst_62 = arith.constant dense<0.000000e+00> : vector<2x128xf32>
    %207 = tpu.matmul %167, %4, %cst_62 {dimension_numbers = #tpu.dot_dimension_numbers<[1], [0], [0], [1], [0, 0, 1, 1], [], []>} : vector<2x32xf32>, vector<32x128xf32>, vector<2x128xf32> -> vector<2x128xf32>
    %208 = arith.addf %206, %207 : vector<2x128xf32>
    %209 = vector.broadcast %6 : vector<1x128xf32> to vector<2x128xf32>
    %210 = arith.addf %208, %209 : vector<2x128xf32>
    %211 = vector.extract_strided_slice %210 {offsets = [0, 0], sizes = [2, 32], strides = [1, 1]} : vector<2x128xf32> to vector<2x32xf32>
    %212 = arith.negf %211 : vector<2x32xf32>
    %213 = math.exp %212 : vector<2x32xf32>
    %cst_63 = arith.constant 1.000000e+00 : f32
    %214 = vector.broadcast %cst_63 : f32 to vector<2x32xf32>
    %215 = arith.addf %214, %213 : vector<2x32xf32>
    %216 = arith.divf %214, %215 : vector<2x32xf32>
    %217 = vector.extract_strided_slice %210 {offsets = [0, 32], sizes = [2, 32], strides = [1, 1]} : vector<2x128xf32> to vector<2x32xf32>
    %218 = arith.negf %217 : vector<2x32xf32>
    %219 = math.exp %218 : vector<2x32xf32>
    %cst_64 = arith.constant 1.000000e+00 : f32
    %220 = vector.broadcast %cst_64 : f32 to vector<2x32xf32>
    %221 = arith.addf %220, %219 : vector<2x32xf32>
    %222 = arith.divf %220, %221 : vector<2x32xf32>
    %223 = vector.extract_strided_slice %210 {offsets = [0, 64], sizes = [2, 32], strides = [1, 1]} : vector<2x128xf32> to vector<2x32xf32>
    %224 = math.tanh %223 : vector<2x32xf32>
    %225 = vector.extract_strided_slice %210 {offsets = [0, 96], sizes = [2, 32], strides = [1, 1]} : vector<2x128xf32> to vector<2x32xf32>
    %226 = arith.negf %225 : vector<2x32xf32>
    %227 = math.exp %226 : vector<2x32xf32>
    %cst_65 = arith.constant 1.000000e+00 : f32
    %228 = vector.broadcast %cst_65 : f32 to vector<2x32xf32>
    %229 = arith.addf %228, %227 : vector<2x32xf32>
    %230 = arith.divf %228, %229 : vector<2x32xf32>
    %231 = arith.mulf %222, %165 : vector<2x32xf32>
    %232 = arith.mulf %216, %224 : vector<2x32xf32>
    %233 = arith.addf %231, %232 : vector<2x32xf32>
    %234 = math.tanh %233 : vector<2x32xf32>
    %235 = arith.mulf %230, %234 : vector<2x32xf32>
    %cst_66 = arith.constant dense<0.000000e+00> : vector<2x128xf32>
    %236 = tpu.matmul %235, %3, %cst_66 {dimension_numbers = #tpu.dot_dimension_numbers<[1], [0], [0], [1], [0, 0, 1, 1], [], []>} : vector<2x32xf32>, vector<32x128xf32>, vector<2x128xf32> -> vector<2x128xf32>
    %cst_67 = arith.constant dense<0.000000e+00> : vector<2x128xf32>
    %237 = tpu.matmul %197, %5, %cst_67 {dimension_numbers = #tpu.dot_dimension_numbers<[1], [0], [0], [1], [0, 0, 1, 1], [], []>} : vector<2x32xf32>, vector<32x128xf32>, vector<2x128xf32> -> vector<2x128xf32>
    %238 = arith.addf %236, %237 : vector<2x128xf32>
    %239 = vector.broadcast %7 : vector<1x128xf32> to vector<2x128xf32>
    %240 = arith.addf %238, %239 : vector<2x128xf32>
    %241 = vector.extract_strided_slice %240 {offsets = [0, 0], sizes = [2, 32], strides = [1, 1]} : vector<2x128xf32> to vector<2x32xf32>
    %242 = arith.negf %241 : vector<2x32xf32>
    %243 = math.exp %242 : vector<2x32xf32>
    %cst_68 = arith.constant 1.000000e+00 : f32
    %244 = vector.broadcast %cst_68 : f32 to vector<2x32xf32>
    %245 = arith.addf %244, %243 : vector<2x32xf32>
    %246 = arith.divf %244, %245 : vector<2x32xf32>
    %247 = vector.extract_strided_slice %240 {offsets = [0, 32], sizes = [2, 32], strides = [1, 1]} : vector<2x128xf32> to vector<2x32xf32>
    %248 = arith.negf %247 : vector<2x32xf32>
    %249 = math.exp %248 : vector<2x32xf32>
    %cst_69 = arith.constant 1.000000e+00 : f32
    %250 = vector.broadcast %cst_69 : f32 to vector<2x32xf32>
    %251 = arith.addf %250, %249 : vector<2x32xf32>
    %252 = arith.divf %250, %251 : vector<2x32xf32>
    %253 = vector.extract_strided_slice %240 {offsets = [0, 64], sizes = [2, 32], strides = [1, 1]} : vector<2x128xf32> to vector<2x32xf32>
    %254 = math.tanh %253 : vector<2x32xf32>
    %255 = vector.extract_strided_slice %240 {offsets = [0, 96], sizes = [2, 32], strides = [1, 1]} : vector<2x128xf32> to vector<2x32xf32>
    %256 = arith.negf %255 : vector<2x32xf32>
    %257 = math.exp %256 : vector<2x32xf32>
    %cst_70 = arith.constant 1.000000e+00 : f32
    %258 = vector.broadcast %cst_70 : f32 to vector<2x32xf32>
    %259 = arith.addf %258, %257 : vector<2x32xf32>
    %260 = arith.divf %258, %259 : vector<2x32xf32>
    %261 = arith.mulf %252, %195 : vector<2x32xf32>
    %262 = arith.mulf %246, %254 : vector<2x32xf32>
    %263 = arith.addf %261, %262 : vector<2x32xf32>
    %264 = math.tanh %263 : vector<2x32xf32>
    %265 = arith.mulf %260, %264 : vector<2x32xf32>
    %cst_71 = arith.constant dense<0.000000e+00> : vector<2x16xf32>
    %266 = tpu.matmul %265, %0, %cst_71 {dimension_numbers = #tpu.dot_dimension_numbers<[1], [0], [0], [1], [0, 0, 1, 1], [], []>} : vector<2x32xf32>, vector<32x16xf32>, vector<2x16xf32> -> vector<2x16xf32>
    %267 = vector.broadcast %1 : vector<1x16xf32> to vector<2x16xf32>
    %268 = arith.addf %266, %267 : vector<2x16xf32>
    %c1_72 = arith.constant 1 : index
    %c0_73 = arith.constant 0 : index
    %c0_74 = arith.constant 0 : index
    %269 = vector.load %arg9[%c1_72, %c0_73, %c0_74] : memref<6x2x16xf32, #tpu.memory_space<vmem>>, vector<1x2x16xf32>
    %270 = vector.shape_cast %269 : vector<1x2x16xf32> to vector<2x16xf32>
    %271 = vector.shape_cast %268 : vector<2x16xf32> to vector<1x2x16xf32>
    tpu.vector_store %arg9[%c1_72, %c0_73, %c0_74], %271 {strides = array<i32>} : memref<6x2x16xf32, #tpu.memory_space<vmem>>, vector<1x2x16xf32>,
    %c4 = arith.constant 4 : index
    %c0_75 = arith.constant 0 : index
    %c0_76 = arith.constant 0 : index
    %272 = vector.load %arg0[%c4, %c0_75, %c0_76] : memref<8x2x8xf32, #tpu.memory_space<vmem>>, vector<1x2x8xf32>
    %273 = vector.shape_cast %272 : vector<1x2x8xf32> to vector<2x8xf32>
    %cst_77 = arith.constant dense<0.000000e+00> : vector<2x128xf32>
    %274 = tpu.matmul %273, %2, %cst_77 {dimension_numbers = #tpu.dot_dimension_numbers<[1], [0], [0], [1], [0, 0, 1, 1], [], []>} : vector<2x8xf32>, vector<8x128xf32>, vector<2x128xf32> -> vector<2x128xf32>
    %cst_78 = arith.constant dense<0.000000e+00> : vector<2x128xf32>
    %275 = tpu.matmul %235, %4, %cst_78 {dimension_numbers = #tpu.dot_dimension_numbers<[1], [0], [0], [1], [0, 0, 1, 1], [], []>} : vector<2x32xf32>, vector<32x128xf32>, vector<2x128xf32> -> vector<2x128xf32>
    %276 = arith.addf %274, %275 : vector<2x128xf32>
    %277 = vector.broadcast %6 : vector<1x128xf32> to vector<2x128xf32>
    %278 = arith.addf %276, %277 : vector<2x128xf32>
    %279 = vector.extract_strided_slice %278 {offsets = [0, 0], sizes = [2, 32], strides = [1, 1]} : vector<2x128xf32> to vector<2x32xf32>
    %280 = arith.negf %279 : vector<2x32xf32>
    %281 = math.exp %280 : vector<2x32xf32>
    %cst_79 = arith.constant 1.000000e+00 : f32
    %282 = vector.broadcast %cst_79 : f32 to vector<2x32xf32>
    %283 = arith.addf %282, %281 : vector<2x32xf32>
    %284 = arith.divf %282, %283 : vector<2x32xf32>
    %285 = vector.extract_strided_slice %278 {offsets = [0, 32], sizes = [2, 32], strides = [1, 1]} : vector<2x128xf32> to vector<2x32xf32>
    %286 = arith.negf %285 : vector<2x32xf32>
    %287 = math.exp %286 : vector<2x32xf32>
    %cst_80 = arith.constant 1.000000e+00 : f32
    %288 = vector.broadcast %cst_80 : f32 to vector<2x32xf32>
    %289 = arith.addf %288, %287 : vector<2x32xf32>
    %290 = arith.divf %288, %289 : vector<2x32xf32>
    %291 = vector.extract_strided_slice %278 {offsets = [0, 64], sizes = [2, 32], strides = [1, 1]} : vector<2x128xf32> to vector<2x32xf32>
    %292 = math.tanh %291 : vector<2x32xf32>
    %293 = vector.extract_strided_slice %278 {offsets = [0, 96], sizes = [2, 32], strides = [1, 1]} : vector<2x128xf32> to vector<2x32xf32>
    %294 = arith.negf %293 : vector<2x32xf32>
    %295 = math.exp %294 : vector<2x32xf32>
    %cst_81 = arith.constant 1.000000e+00 : f32
    %296 = vector.broadcast %cst_81 : f32 to vector<2x32xf32>
    %297 = arith.addf %296, %295 : vector<2x32xf32>
    %298 = arith.divf %296, %297 : vector<2x32xf32>
    %299 = arith.mulf %290, %233 : vector<2x32xf32>
    %300 = arith.mulf %284, %292 : vector<2x32xf32>
    %301 = arith.addf %299, %300 : vector<2x32xf32>
    %302 = math.tanh %301 : vector<2x32xf32>
    %303 = arith.mulf %298, %302 : vector<2x32xf32>
    %cst_82 = arith.constant dense<0.000000e+00> : vector<2x128xf32>
    %304 = tpu.matmul %303, %3, %cst_82 {dimension_numbers = #tpu.dot_dimension_numbers<[1], [0], [0], [1], [0, 0, 1, 1], [], []>} : vector<2x32xf32>, vector<32x128xf32>, vector<2x128xf32> -> vector<2x128xf32>
    %cst_83 = arith.constant dense<0.000000e+00> : vector<2x128xf32>
    %305 = tpu.matmul %265, %5, %cst_83 {dimension_numbers = #tpu.dot_dimension_numbers<[1], [0], [0], [1], [0, 0, 1, 1], [], []>} : vector<2x32xf32>, vector<32x128xf32>, vector<2x128xf32> -> vector<2x128xf32>
    %306 = arith.addf %304, %305 : vector<2x128xf32>
    %307 = vector.broadcast %7 : vector<1x128xf32> to vector<2x128xf32>
    %308 = arith.addf %306, %307 : vector<2x128xf32>
    %309 = vector.extract_strided_slice %308 {offsets = [0, 0], sizes = [2, 32], strides = [1, 1]} : vector<2x128xf32> to vector<2x32xf32>
    %310 = arith.negf %309 : vector<2x32xf32>
    %311 = math.exp %310 : vector<2x32xf32>
    %cst_84 = arith.constant 1.000000e+00 : f32
    %312 = vector.broadcast %cst_84 : f32 to vector<2x32xf32>
    %313 = arith.addf %312, %311 : vector<2x32xf32>
    %314 = arith.divf %312, %313 : vector<2x32xf32>
    %315 = vector.extract_strided_slice %308 {offsets = [0, 32], sizes = [2, 32], strides = [1, 1]} : vector<2x128xf32> to vector<2x32xf32>
    %316 = arith.negf %315 : vector<2x32xf32>
    %317 = math.exp %316 : vector<2x32xf32>
    %cst_85 = arith.constant 1.000000e+00 : f32
    %318 = vector.broadcast %cst_85 : f32 to vector<2x32xf32>
    %319 = arith.addf %318, %317 : vector<2x32xf32>
    %320 = arith.divf %318, %319 : vector<2x32xf32>
    %321 = vector.extract_strided_slice %308 {offsets = [0, 64], sizes = [2, 32], strides = [1, 1]} : vector<2x128xf32> to vector<2x32xf32>
    %322 = math.tanh %321 : vector<2x32xf32>
    %323 = vector.extract_strided_slice %308 {offsets = [0, 96], sizes = [2, 32], strides = [1, 1]} : vector<2x128xf32> to vector<2x32xf32>
    %324 = arith.negf %323 : vector<2x32xf32>
    %325 = math.exp %324 : vector<2x32xf32>
    %cst_86 = arith.constant 1.000000e+00 : f32
    %326 = vector.broadcast %cst_86 : f32 to vector<2x32xf32>
    %327 = arith.addf %326, %325 : vector<2x32xf32>
    %328 = arith.divf %326, %327 : vector<2x32xf32>
    %329 = arith.mulf %320, %263 : vector<2x32xf32>
    %330 = arith.mulf %314, %322 : vector<2x32xf32>
    %331 = arith.addf %329, %330 : vector<2x32xf32>
    %332 = math.tanh %331 : vector<2x32xf32>
    %333 = arith.mulf %328, %332 : vector<2x32xf32>
    %cst_87 = arith.constant dense<0.000000e+00> : vector<2x16xf32>
    %334 = tpu.matmul %333, %0, %cst_87 {dimension_numbers = #tpu.dot_dimension_numbers<[1], [0], [0], [1], [0, 0, 1, 1], [], []>} : vector<2x32xf32>, vector<32x16xf32>, vector<2x16xf32> -> vector<2x16xf32>
    %335 = vector.broadcast %1 : vector<1x16xf32> to vector<2x16xf32>
    %336 = arith.addf %334, %335 : vector<2x16xf32>
    %c2_88 = arith.constant 2 : index
    %c0_89 = arith.constant 0 : index
    %c0_90 = arith.constant 0 : index
    %337 = vector.load %arg9[%c2_88, %c0_89, %c0_90] : memref<6x2x16xf32, #tpu.memory_space<vmem>>, vector<1x2x16xf32>
    %338 = vector.shape_cast %337 : vector<1x2x16xf32> to vector<2x16xf32>
    %339 = vector.shape_cast %336 : vector<2x16xf32> to vector<1x2x16xf32>
    tpu.vector_store %arg9[%c2_88, %c0_89, %c0_90], %339 {strides = array<i32>} : memref<6x2x16xf32, #tpu.memory_space<vmem>>, vector<1x2x16xf32>,
    %c5 = arith.constant 5 : index
    %c0_91 = arith.constant 0 : index
    %c0_92 = arith.constant 0 : index
    %340 = vector.load %arg0[%c5, %c0_91, %c0_92] : memref<8x2x8xf32, #tpu.memory_space<vmem>>, vector<1x2x8xf32>
    %341 = vector.shape_cast %340 : vector<1x2x8xf32> to vector<2x8xf32>
    %cst_93 = arith.constant dense<0.000000e+00> : vector<2x128xf32>
    %342 = tpu.matmul %341, %2, %cst_93 {dimension_numbers = #tpu.dot_dimension_numbers<[1], [0], [0], [1], [0, 0, 1, 1], [], []>} : vector<2x8xf32>, vector<8x128xf32>, vector<2x128xf32> -> vector<2x128xf32>
    %cst_94 = arith.constant dense<0.000000e+00> : vector<2x128xf32>
    %343 = tpu.matmul %303, %4, %cst_94 {dimension_numbers = #tpu.dot_dimension_numbers<[1], [0], [0], [1], [0, 0, 1, 1], [], []>} : vector<2x32xf32>, vector<32x128xf32>, vector<2x128xf32> -> vector<2x128xf32>
    %344 = arith.addf %342, %343 : vector<2x128xf32>
    %345 = vector.broadcast %6 : vector<1x128xf32> to vector<2x128xf32>
    %346 = arith.addf %344, %345 : vector<2x128xf32>
    %347 = vector.extract_strided_slice %346 {offsets = [0, 0], sizes = [2, 32], strides = [1, 1]} : vector<2x128xf32> to vector<2x32xf32>
    %348 = arith.negf %347 : vector<2x32xf32>
    %349 = math.exp %348 : vector<2x32xf32>
    %cst_95 = arith.constant 1.000000e+00 : f32
    %350 = vector.broadcast %cst_95 : f32 to vector<2x32xf32>
    %351 = arith.addf %350, %349 : vector<2x32xf32>
    %352 = arith.divf %350, %351 : vector<2x32xf32>
    %353 = vector.extract_strided_slice %346 {offsets = [0, 32], sizes = [2, 32], strides = [1, 1]} : vector<2x128xf32> to vector<2x32xf32>
    %354 = arith.negf %353 : vector<2x32xf32>
    %355 = math.exp %354 : vector<2x32xf32>
    %cst_96 = arith.constant 1.000000e+00 : f32
    %356 = vector.broadcast %cst_96 : f32 to vector<2x32xf32>
    %357 = arith.addf %356, %355 : vector<2x32xf32>
    %358 = arith.divf %356, %357 : vector<2x32xf32>
    %359 = vector.extract_strided_slice %346 {offsets = [0, 64], sizes = [2, 32], strides = [1, 1]} : vector<2x128xf32> to vector<2x32xf32>
    %360 = math.tanh %359 : vector<2x32xf32>
    %361 = vector.extract_strided_slice %346 {offsets = [0, 96], sizes = [2, 32], strides = [1, 1]} : vector<2x128xf32> to vector<2x32xf32>
    %362 = arith.negf %361 : vector<2x32xf32>
    %363 = math.exp %362 : vector<2x32xf32>
    %cst_97 = arith.constant 1.000000e+00 : f32
    %364 = vector.broadcast %cst_97 : f32 to vector<2x32xf32>
    %365 = arith.addf %364, %363 : vector<2x32xf32>
    %366 = arith.divf %364, %365 : vector<2x32xf32>
    %367 = arith.mulf %358, %301 : vector<2x32xf32>
    %368 = arith.mulf %352, %360 : vector<2x32xf32>
    %369 = arith.addf %367, %368 : vector<2x32xf32>
    %370 = math.tanh %369 : vector<2x32xf32>
    %371 = arith.mulf %366, %370 : vector<2x32xf32>
    %cst_98 = arith.constant dense<0.000000e+00> : vector<2x128xf32>
    %372 = tpu.matmul %371, %3, %cst_98 {dimension_numbers = #tpu.dot_dimension_numbers<[1], [0], [0], [1], [0, 0, 1, 1], [], []>} : vector<2x32xf32>, vector<32x128xf32>, vector<2x128xf32> -> vector<2x128xf32>
    %cst_99 = arith.constant dense<0.000000e+00> : vector<2x128xf32>
    %373 = tpu.matmul %333, %5, %cst_99 {dimension_numbers = #tpu.dot_dimension_numbers<[1], [0], [0], [1], [0, 0, 1, 1], [], []>} : vector<2x32xf32>, vector<32x128xf32>, vector<2x128xf32> -> vector<2x128xf32>
    %374 = arith.addf %372, %373 : vector<2x128xf32>
    %375 = vector.broadcast %7 : vector<1x128xf32> to vector<2x128xf32>
    %376 = arith.addf %374, %375 : vector<2x128xf32>
    %377 = vector.extract_strided_slice %376 {offsets = [0, 0], sizes = [2, 32], strides = [1, 1]} : vector<2x128xf32> to vector<2x32xf32>
    %378 = arith.negf %377 : vector<2x32xf32>
    %379 = math.exp %378 : vector<2x32xf32>
    %cst_100 = arith.constant 1.000000e+00 : f32
    %380 = vector.broadcast %cst_100 : f32 to vector<2x32xf32>
    %381 = arith.addf %380, %379 : vector<2x32xf32>
    %382 = arith.divf %380, %381 : vector<2x32xf32>
    %383 = vector.extract_strided_slice %376 {offsets = [0, 32], sizes = [2, 32], strides = [1, 1]} : vector<2x128xf32> to vector<2x32xf32>
    %384 = arith.negf %383 : vector<2x32xf32>
    %385 = math.exp %384 : vector<2x32xf32>
    %cst_101 = arith.constant 1.000000e+00 : f32
    %386 = vector.broadcast %cst_101 : f32 to vector<2x32xf32>
    %387 = arith.addf %386, %385 : vector<2x32xf32>
    %388 = arith.divf %386, %387 : vector<2x32xf32>
    %389 = vector.extract_strided_slice %376 {offsets = [0, 64], sizes = [2, 32], strides = [1, 1]} : vector<2x128xf32> to vector<2x32xf32>
    %390 = math.tanh %389 : vector<2x32xf32>
    %391 = vector.extract_strided_slice %376 {offsets = [0, 96], sizes = [2, 32], strides = [1, 1]} : vector<2x128xf32> to vector<2x32xf32>
    %392 = arith.negf %391 : vector<2x32xf32>
    %393 = math.exp %392 : vector<2x32xf32>
    %cst_102 = arith.constant 1.000000e+00 : f32
    %394 = vector.broadcast %cst_102 : f32 to vector<2x32xf32>
    %395 = arith.addf %394, %393 : vector<2x32xf32>
    %396 = arith.divf %394, %395 : vector<2x32xf32>
    %397 = arith.mulf %388, %331 : vector<2x32xf32>
    %398 = arith.mulf %382, %390 : vector<2x32xf32>
    %399 = arith.addf %397, %398 : vector<2x32xf32>
    %400 = math.tanh %399 : vector<2x32xf32>
    %401 = arith.mulf %396, %400 : vector<2x32xf32>
    %cst_103 = arith.constant dense<0.000000e+00> : vector<2x16xf32>
    %402 = tpu.matmul %401, %0, %cst_103 {dimension_numbers = #tpu.dot_dimension_numbers<[1], [0], [0], [1], [0, 0, 1, 1], [], []>} : vector<2x32xf32>, vector<32x16xf32>, vector<2x16xf32> -> vector<2x16xf32>
    %403 = vector.broadcast %1 : vector<1x16xf32> to vector<2x16xf32>
    %404 = arith.addf %402, %403 : vector<2x16xf32>
    %c3_104 = arith.constant 3 : index
    %c0_105 = arith.constant 0 : index
    %c0_106 = arith.constant 0 : index
    %405 = vector.load %arg9[%c3_104, %c0_105, %c0_106] : memref<6x2x16xf32, #tpu.memory_space<vmem>>, vector<1x2x16xf32>
    %406 = vector.shape_cast %405 : vector<1x2x16xf32> to vector<2x16xf32>
    %407 = vector.shape_cast %404 : vector<2x16xf32> to vector<1x2x16xf32>
    tpu.vector_store %arg9[%c3_104, %c0_105, %c0_106], %407 {strides = array<i32>} : memref<6x2x16xf32, #tpu.memory_space<vmem>>, vector<1x2x16xf32>,
    %c6 = arith.constant 6 : index
    %c0_107 = arith.constant 0 : index
    %c0_108 = arith.constant 0 : index
    %408 = vector.load %arg0[%c6, %c0_107, %c0_108] : memref<8x2x8xf32, #tpu.memory_space<vmem>>, vector<1x2x8xf32>
    %409 = vector.shape_cast %408 : vector<1x2x8xf32> to vector<2x8xf32>
    %cst_109 = arith.constant dense<0.000000e+00> : vector<2x128xf32>
    %410 = tpu.matmul %409, %2, %cst_109 {dimension_numbers = #tpu.dot_dimension_numbers<[1], [0], [0], [1], [0, 0, 1, 1], [], []>} : vector<2x8xf32>, vector<8x128xf32>, vector<2x128xf32> -> vector<2x128xf32>
    %cst_110 = arith.constant dense<0.000000e+00> : vector<2x128xf32>
    %411 = tpu.matmul %371, %4, %cst_110 {dimension_numbers = #tpu.dot_dimension_numbers<[1], [0], [0], [1], [0, 0, 1, 1], [], []>} : vector<2x32xf32>, vector<32x128xf32>, vector<2x128xf32> -> vector<2x128xf32>
    %412 = arith.addf %410, %411 : vector<2x128xf32>
    %413 = vector.broadcast %6 : vector<1x128xf32> to vector<2x128xf32>
    %414 = arith.addf %412, %413 : vector<2x128xf32>
    %415 = vector.extract_strided_slice %414 {offsets = [0, 0], sizes = [2, 32], strides = [1, 1]} : vector<2x128xf32> to vector<2x32xf32>
    %416 = arith.negf %415 : vector<2x32xf32>
    %417 = math.exp %416 : vector<2x32xf32>
    %cst_111 = arith.constant 1.000000e+00 : f32
    %418 = vector.broadcast %cst_111 : f32 to vector<2x32xf32>
    %419 = arith.addf %418, %417 : vector<2x32xf32>
    %420 = arith.divf %418, %419 : vector<2x32xf32>
    %421 = vector.extract_strided_slice %414 {offsets = [0, 32], sizes = [2, 32], strides = [1, 1]} : vector<2x128xf32> to vector<2x32xf32>
    %422 = arith.negf %421 : vector<2x32xf32>
    %423 = math.exp %422 : vector<2x32xf32>
    %cst_112 = arith.constant 1.000000e+00 : f32
    %424 = vector.broadcast %cst_112 : f32 to vector<2x32xf32>
    %425 = arith.addf %424, %423 : vector<2x32xf32>
    %426 = arith.divf %424, %425 : vector<2x32xf32>
    %427 = vector.extract_strided_slice %414 {offsets = [0, 64], sizes = [2, 32], strides = [1, 1]} : vector<2x128xf32> to vector<2x32xf32>
    %428 = math.tanh %427 : vector<2x32xf32>
    %429 = vector.extract_strided_slice %414 {offsets = [0, 96], sizes = [2, 32], strides = [1, 1]} : vector<2x128xf32> to vector<2x32xf32>
    %430 = arith.negf %429 : vector<2x32xf32>
    %431 = math.exp %430 : vector<2x32xf32>
    %cst_113 = arith.constant 1.000000e+00 : f32
    %432 = vector.broadcast %cst_113 : f32 to vector<2x32xf32>
    %433 = arith.addf %432, %431 : vector<2x32xf32>
    %434 = arith.divf %432, %433 : vector<2x32xf32>
    %435 = arith.mulf %426, %369 : vector<2x32xf32>
    %436 = arith.mulf %420, %428 : vector<2x32xf32>
    %437 = arith.addf %435, %436 : vector<2x32xf32>
    %438 = math.tanh %437 : vector<2x32xf32>
    %439 = arith.mulf %434, %438 : vector<2x32xf32>
    %cst_114 = arith.constant dense<0.000000e+00> : vector<2x128xf32>
    %440 = tpu.matmul %439, %3, %cst_114 {dimension_numbers = #tpu.dot_dimension_numbers<[1], [0], [0], [1], [0, 0, 1, 1], [], []>} : vector<2x32xf32>, vector<32x128xf32>, vector<2x128xf32> -> vector<2x128xf32>
    %cst_115 = arith.constant dense<0.000000e+00> : vector<2x128xf32>
    %441 = tpu.matmul %401, %5, %cst_115 {dimension_numbers = #tpu.dot_dimension_numbers<[1], [0], [0], [1], [0, 0, 1, 1], [], []>} : vector<2x32xf32>, vector<32x128xf32>, vector<2x128xf32> -> vector<2x128xf32>
    %442 = arith.addf %440, %441 : vector<2x128xf32>
    %443 = vector.broadcast %7 : vector<1x128xf32> to vector<2x128xf32>
    %444 = arith.addf %442, %443 : vector<2x128xf32>
    %445 = vector.extract_strided_slice %444 {offsets = [0, 0], sizes = [2, 32], strides = [1, 1]} : vector<2x128xf32> to vector<2x32xf32>
    %446 = arith.negf %445 : vector<2x32xf32>
    %447 = math.exp %446 : vector<2x32xf32>
    %cst_116 = arith.constant 1.000000e+00 : f32
    %448 = vector.broadcast %cst_116 : f32 to vector<2x32xf32>
    %449 = arith.addf %448, %447 : vector<2x32xf32>
    %450 = arith.divf %448, %449 : vector<2x32xf32>
    %451 = vector.extract_strided_slice %444 {offsets = [0, 32], sizes = [2, 32], strides = [1, 1]} : vector<2x128xf32> to vector<2x32xf32>
    %452 = arith.negf %451 : vector<2x32xf32>
    %453 = math.exp %452 : vector<2x32xf32>
    %cst_117 = arith.constant 1.000000e+00 : f32
    %454 = vector.broadcast %cst_117 : f32 to vector<2x32xf32>
    %455 = arith.addf %454, %453 : vector<2x32xf32>
    %456 = arith.divf %454, %455 : vector<2x32xf32>
    %457 = vector.extract_strided_slice %444 {offsets = [0, 64], sizes = [2, 32], strides = [1, 1]} : vector<2x128xf32> to vector<2x32xf32>
    %458 = math.tanh %457 : vector<2x32xf32>
    %459 = vector.extract_strided_slice %444 {offsets = [0, 96], sizes = [2, 32], strides = [1, 1]} : vector<2x128xf32> to vector<2x32xf32>
    %460 = arith.negf %459 : vector<2x32xf32>
    %461 = math.exp %460 : vector<2x32xf32>
    %cst_118 = arith.constant 1.000000e+00 : f32
    %462 = vector.broadcast %cst_118 : f32 to vector<2x32xf32>
    %463 = arith.addf %462, %461 : vector<2x32xf32>
    %464 = arith.divf %462, %463 : vector<2x32xf32>
    %465 = arith.mulf %456, %399 : vector<2x32xf32>
    %466 = arith.mulf %450, %458 : vector<2x32xf32>
    %467 = arith.addf %465, %466 : vector<2x32xf32>
    %468 = math.tanh %467 : vector<2x32xf32>
    %469 = arith.mulf %464, %468 : vector<2x32xf32>
    %cst_119 = arith.constant dense<0.000000e+00> : vector<2x16xf32>
    %470 = tpu.matmul %469, %0, %cst_119 {dimension_numbers = #tpu.dot_dimension_numbers<[1], [0], [0], [1], [0, 0, 1, 1], [], []>} : vector<2x32xf32>, vector<32x16xf32>, vector<2x16xf32> -> vector<2x16xf32>
    %471 = vector.broadcast %1 : vector<1x16xf32> to vector<2x16xf32>
    %472 = arith.addf %470, %471 : vector<2x16xf32>
    %c4_120 = arith.constant 4 : index
    %c0_121 = arith.constant 0 : index
    %c0_122 = arith.constant 0 : index
    %473 = vector.load %arg9[%c4_120, %c0_121, %c0_122] : memref<6x2x16xf32, #tpu.memory_space<vmem>>, vector<1x2x16xf32>
    %474 = vector.shape_cast %473 : vector<1x2x16xf32> to vector<2x16xf32>
    %475 = vector.shape_cast %472 : vector<2x16xf32> to vector<1x2x16xf32>
    tpu.vector_store %arg9[%c4_120, %c0_121, %c0_122], %475 {strides = array<i32>} : memref<6x2x16xf32, #tpu.memory_space<vmem>>, vector<1x2x16xf32>,
    %c7 = arith.constant 7 : index
    %c0_123 = arith.constant 0 : index
    %c0_124 = arith.constant 0 : index
    %476 = vector.load %arg0[%c7, %c0_123, %c0_124] : memref<8x2x8xf32, #tpu.memory_space<vmem>>, vector<1x2x8xf32>
    %477 = vector.shape_cast %476 : vector<1x2x8xf32> to vector<2x8xf32>
    %cst_125 = arith.constant dense<0.000000e+00> : vector<2x128xf32>
    %478 = tpu.matmul %477, %2, %cst_125 {dimension_numbers = #tpu.dot_dimension_numbers<[1], [0], [0], [1], [0, 0, 1, 1], [], []>} : vector<2x8xf32>, vector<8x128xf32>, vector<2x128xf32> -> vector<2x128xf32>
    %cst_126 = arith.constant dense<0.000000e+00> : vector<2x128xf32>
    %479 = tpu.matmul %439, %4, %cst_126 {dimension_numbers = #tpu.dot_dimension_numbers<[1], [0], [0], [1], [0, 0, 1, 1], [], []>} : vector<2x32xf32>, vector<32x128xf32>, vector<2x128xf32> -> vector<2x128xf32>
    %480 = arith.addf %478, %479 : vector<2x128xf32>
    %481 = vector.broadcast %6 : vector<1x128xf32> to vector<2x128xf32>
    %482 = arith.addf %480, %481 : vector<2x128xf32>
    %483 = vector.extract_strided_slice %482 {offsets = [0, 0], sizes = [2, 32], strides = [1, 1]} : vector<2x128xf32> to vector<2x32xf32>
    %484 = arith.negf %483 : vector<2x32xf32>
    %485 = math.exp %484 : vector<2x32xf32>
    %cst_127 = arith.constant 1.000000e+00 : f32
    %486 = vector.broadcast %cst_127 : f32 to vector<2x32xf32>
    %487 = arith.addf %486, %485 : vector<2x32xf32>
    %488 = arith.divf %486, %487 : vector<2x32xf32>
    %489 = vector.extract_strided_slice %482 {offsets = [0, 32], sizes = [2, 32], strides = [1, 1]} : vector<2x128xf32> to vector<2x32xf32>
    %490 = arith.negf %489 : vector<2x32xf32>
    %491 = math.exp %490 : vector<2x32xf32>
    %cst_128 = arith.constant 1.000000e+00 : f32
    %492 = vector.broadcast %cst_128 : f32 to vector<2x32xf32>
    %493 = arith.addf %492, %491 : vector<2x32xf32>
    %494 = arith.divf %492, %493 : vector<2x32xf32>
    %495 = vector.extract_strided_slice %482 {offsets = [0, 64], sizes = [2, 32], strides = [1, 1]} : vector<2x128xf32> to vector<2x32xf32>
    %496 = math.tanh %495 : vector<2x32xf32>
    %497 = vector.extract_strided_slice %482 {offsets = [0, 96], sizes = [2, 32], strides = [1, 1]} : vector<2x128xf32> to vector<2x32xf32>
    %498 = arith.negf %497 : vector<2x32xf32>
    %499 = math.exp %498 : vector<2x32xf32>
    %cst_129 = arith.constant 1.000000e+00 : f32
    %500 = vector.broadcast %cst_129 : f32 to vector<2x32xf32>
    %501 = arith.addf %500, %499 : vector<2x32xf32>
    %502 = arith.divf %500, %501 : vector<2x32xf32>
    %503 = arith.mulf %494, %437 : vector<2x32xf32>
    %504 = arith.mulf %488, %496 : vector<2x32xf32>
    %505 = arith.addf %503, %504 : vector<2x32xf32>
    %506 = math.tanh %505 : vector<2x32xf32>
    %507 = arith.mulf %502, %506 : vector<2x32xf32>
    %cst_130 = arith.constant dense<0.000000e+00> : vector<2x128xf32>
    %508 = tpu.matmul %507, %3, %cst_130 {dimension_numbers = #tpu.dot_dimension_numbers<[1], [0], [0], [1], [0, 0, 1, 1], [], []>} : vector<2x32xf32>, vector<32x128xf32>, vector<2x128xf32> -> vector<2x128xf32>
    %cst_131 = arith.constant dense<0.000000e+00> : vector<2x128xf32>
    %509 = tpu.matmul %469, %5, %cst_131 {dimension_numbers = #tpu.dot_dimension_numbers<[1], [0], [0], [1], [0, 0, 1, 1], [], []>} : vector<2x32xf32>, vector<32x128xf32>, vector<2x128xf32> -> vector<2x128xf32>
    %510 = arith.addf %508, %509 : vector<2x128xf32>
    %511 = vector.broadcast %7 : vector<1x128xf32> to vector<2x128xf32>
    %512 = arith.addf %510, %511 : vector<2x128xf32>
    %513 = vector.extract_strided_slice %512 {offsets = [0, 0], sizes = [2, 32], strides = [1, 1]} : vector<2x128xf32> to vector<2x32xf32>
    %514 = arith.negf %513 : vector<2x32xf32>
    %515 = math.exp %514 : vector<2x32xf32>
    %cst_132 = arith.constant 1.000000e+00 : f32
    %516 = vector.broadcast %cst_132 : f32 to vector<2x32xf32>
    %517 = arith.addf %516, %515 : vector<2x32xf32>
    %518 = arith.divf %516, %517 : vector<2x32xf32>
    %519 = vector.extract_strided_slice %512 {offsets = [0, 32], sizes = [2, 32], strides = [1, 1]} : vector<2x128xf32> to vector<2x32xf32>
    %520 = arith.negf %519 : vector<2x32xf32>
    %521 = math.exp %520 : vector<2x32xf32>
    %cst_133 = arith.constant 1.000000e+00 : f32
    %522 = vector.broadcast %cst_133 : f32 to vector<2x32xf32>
    %523 = arith.addf %522, %521 : vector<2x32xf32>
    %524 = arith.divf %522, %523 : vector<2x32xf32>
    %525 = vector.extract_strided_slice %512 {offsets = [0, 64], sizes = [2, 32], strides = [1, 1]} : vector<2x128xf32> to vector<2x32xf32>
    %526 = math.tanh %525 : vector<2x32xf32>
    %527 = vector.extract_strided_slice %512 {offsets = [0, 96], sizes = [2, 32], strides = [1, 1]} : vector<2x128xf32> to vector<2x32xf32>
    %528 = arith.negf %527 : vector<2x32xf32>
    %529 = math.exp %528 : vector<2x32xf32>
    %cst_134 = arith.constant 1.000000e+00 : f32
    %530 = vector.broadcast %cst_134 : f32 to vector<2x32xf32>
    %531 = arith.addf %530, %529 : vector<2x32xf32>
    %532 = arith.divf %530, %531 : vector<2x32xf32>
    %533 = arith.mulf %524, %467 : vector<2x32xf32>
    %534 = arith.mulf %518, %526 : vector<2x32xf32>
    %535 = arith.addf %533, %534 : vector<2x32xf32>
    %536 = math.tanh %535 : vector<2x32xf32>
    %537 = arith.mulf %532, %536 : vector<2x32xf32>
    %cst_135 = arith.constant dense<0.000000e+00> : vector<2x16xf32>
    %538 = tpu.matmul %537, %0, %cst_135 {dimension_numbers = #tpu.dot_dimension_numbers<[1], [0], [0], [1], [0, 0, 1, 1], [], []>} : vector<2x32xf32>, vector<32x16xf32>, vector<2x16xf32> -> vector<2x16xf32>
    %539 = vector.broadcast %1 : vector<1x16xf32> to vector<2x16xf32>
    %540 = arith.addf %538, %539 : vector<2x16xf32>
    %c5_136 = arith.constant 5 : index
    %c0_137 = arith.constant 0 : index
    %c0_138 = arith.constant 0 : index
    %541 = vector.load %arg9[%c5_136, %c0_137, %c0_138] : memref<6x2x16xf32, #tpu.memory_space<vmem>>, vector<1x2x16xf32>
    %542 = vector.shape_cast %541 : vector<1x2x16xf32> to vector<2x16xf32>
    %543 = vector.shape_cast %540 : vector<2x16xf32> to vector<1x2x16xf32>
    tpu.vector_store %arg9[%c5_136, %c0_137, %c0_138], %543 {strides = array<i32>} : memref<6x2x16xf32, #tpu.memory_space<vmem>>, vector<1x2x16xf32>,
    return
  }
}

</mosaic_0001>

<bundles_post_ra>
// kernel: lstm_baseline_forward.1
= control target key start
LH: loop header
LB: loop body
LE: loop exit
PB: predicated region body
PF: predicated region fallthrough
CT: control target
= control target key end

     0   :  { %v4223_v3 = vmov 0.0|0.0   ;;  %vm4224_vm0 = vmmov 0   ;;  %v4225_v6 = vmov 0.0   ;;  %s4811_s0 = inlined_call_operand.vmem [shape: f32[8,2,8], index: 0, kind: input, shape index: {}]   ;;  %s4812_s1 = inlined_call_operand.vmem [shape: f32[8,128], index: 1, kind: input, shape index: {}]   ;;  %s4813_s2 = inlined_call_operand.vmem [shape: f32[32,128], index: 2, kind: input, shape index: {}]   ;;  %s4814_s3 = inlined_call_operand.vmem [shape: f32[1,128], index: 3, kind: input, shape index: {}]   ;;  %s4815_s4 = inlined_call_operand.vmem [shape: f32[32,128], index: 4, kind: input, shape index: {}]   ;;  %s4816_s5 = inlined_call_operand.vmem [shape: f32[32,128], index: 5, kind: input, shape index: {}]   ;;  %s4817_s6 = inlined_call_operand.vmem [shape: f32[1,128], index: 6, kind: input, shape index: {}]   ;;  %s4818_s7 = inlined_call_operand.vmem [shape: f32[32,16], index: 7, kind: input, shape index: {}]   ;;  %s4819_s8 = inlined_call_operand.vmem [shape: f32[1,16], index: 8, kind: input, shape index: {}]   ;;  %s4820_s9 = inlined_call_operand.hbm [shape: f32[6,2,16], index: 9, kind: output, shape index: {}]  }
   0x1   :  { %v43_v0 = vld [vmem:[%s4813_s2] sm:$0xff]  ;;  %v44_v1 = vld [vmem:[%s4813_s2 + $0x8] sm:$0xff]  ;;  %v45_v2 = vld [vmem:[%s4813_s2 + $0x10] sm:$0xff]  ;;  %3881 = vmatprep.subr.bf16.mxu0 %v4223_v3  ;;  %3519 = vmatprep.mubr.msk.f32.mxu0 %vm4224_vm0, %v4225_v6 }
   0x2   :  { %v4290_v4 = vpack.c.bf16 %v44_v1, %v43_v0  ;;  %v46_v5 = vld [vmem:[%s4813_s2 + $0x18] sm:$0xff]  ;;  %3887 = vmatprep.subr.bf16.mxu1 %v4223_v3  ;;  %3535 = vmatprep.mubr.msk.f32.mxu1 %vm4224_vm0, %v4225_v6 }
   0x3   :  { %14 = vsyncpa [#allocation3], 0  ;;  %v4301_v7 = vpack.c.bf16 %v46_v5, %v45_v2  ;;  %v4309_v8 = vld [vmem:[%s4812_s1] sm:$0xff]  ;;  %vm128_vm1 = vcmask 64512   ;;  %s4226_s22 = smov 64   ;;  %s4227_s23 = smov 32  }
   0x4   :  { %3883 = vmatpush3.bf16.msra.mxu0 %v4290_v4  ;;  %v53_v9 = vld [vmem:[%s4811_s0] sm:$0x3]  ;;  %v48_v28 = vld [vmem:[%s4816_s5 + $0x8] sm:$0xff]  ;;  %v49_v29 = vld [vmem:[%s4816_s5 + $0x10] sm:$0xff]  ;;  %vm54_vm2 = vcmask 261120   ;;  %vm1180_vm3 = vcmask 123904  }
   0x5   :  { %3884 = vmatprep.subr.bf16.mxu0 %v4223_v3  ;;  %v4325_v12 = vld [vmem:[%s4814_s3] ss:$0 sm:$0xff]  ;;  %v50_v31 = vld [vmem:[%s4816_s5 + $0x18] sm:$0xff]  ;;  %v40_v33 = vld [vmem:[%s4815_s4 + $0x8] sm:$0xff] }
   0x6   :  { %v47_v27 = vld [vmem:[%s4816_s5] sm:$0xff]  ;;  %v41_v35 = vld [vmem:[%s4815_s4 + $0x10] sm:$0xff]  ;;  %v42_v36 = vld [vmem:[%s4815_s4 + $0x18] sm:$0xff]  ;;  %v4362_v37 = vpack.c.bf16 %v50_v31, %v49_v29 }
   0x7   :  { %v4342_v30 = vpack.c.bf16 %v48_v28, %v47_v27  ;;  %v39_v32 = vld [vmem:[%s4815_s4] sm:$0xff]  ;;  %v4366_v38 = vpack.c.bf16 %v42_v36, %v41_v35 }
   0x8   :  { %3886 = vmatpush3.bf16.msra.mxu0 %v4301_v7  ;;  %v4353_v34 = vpack.c.bf16 %v40_v33, %v39_v32  ;;  %v3289_v45 = vld [vmem:[%s4811_s0 + $0x2] sm:$0x3]  ;;  %v4407_v46 = vld [vmem:[%s4817_s6] ss:$0 sm:$0xff]  ;;  %v3296_v27 = vld [vmem:[%s4811_s0 + $0x4] sm:$0x3] }
   0x9   :  { %3522 = vmatprep.subr.mxu0 %v4225_v6  ;;  %3889 = vmatpush3.bf16.msra.mxu1 %v4342_v30 }
   0xa   :  { %3890 = vmatprep.subr.bf16.mxu1 %v4223_v3 }
   0xb   :  { %3520 = vmatmul.mubr.f32.vlgmr.msra.gmra.mrb[0].mxu0 %v4225_v6 }
   0xc   :  { %3523 = vmatpush3.msra.mxu0 %v4309_v8  ;;  %3524 = vmatprep.mubr.msk.f32.mxu0 %vm4224_vm0, %v4225_v6 }
   0xd   :  { %3893 = vmatprep.subr.bf16.mxu0 %v4223_v3  ;;  %3892 = vmatpush3.bf16.msra.mxu1 %v4362_v37 }
   0xe   :  { %3899 = vmatprep.subr.bf16.mxu1 %v4223_v3 }
   0xf   :  { %3525 = vmatmul.mubr.msk.f32.vlgmr.msra.gmra.mrb[2].mxu0 %vm128_vm1, %v53_v9 }
  0x10   :  { %3546 = vmatprep.mubr.msk.f32.mxu0 %vm4224_vm0, %v4225_v6  ;;  %3895 = vmatpush3.bf16.msra.mxu0 %v4353_v34 }
  0x11   :  { %3896 = vmatprep.subr.bf16.mxu0 %v4223_v3  ;;  %3536 = vmatmul.mubr.f32.vlgmr.msra.gmra.mrb[0].mxu1 %v4225_v6 }
  0x12   :  { %3901 = vmatpush3.bf16.msra.mxu1 %v4290_v4  ;;  %3557 = vmatprep.mubr.msk.f32.mxu1 %vm4224_vm0, %v4225_v6 }
  0x13   :  { %3902 = vmatprep.subr.bf16.mxu1 %v4223_v3 }
  0x14   :  { %3898 = vmatpush3.bf16.msra.mxu0 %v4366_v38 }
  0x15   :  { %3560 = vmatprep.subr.mxu0 %v4225_v6 }
  0x16   :  { %3904 = vmatpush3.bf16.msra.mxu1 %v4301_v7 }
  0x17   :  { %3905 = vmatprep.subr.bf16.mxu1 %v4223_v3 }
  0xde   :  { %v124_v10 = vpop.f32.mrb[0].mxu0 }
  0xdf   :  { %v3521_v11 = vpop.f32.mrb[1].mxu0 }
  0xe2   :  { %v198_v13 = vpop.f32.mrb[2].mxu0 }
  0xe3   :  { %v199_v14 = vadd.f32 %v198_v13, %v124_v10  ;;  %v3526_v15 = vpop.f32.mrb[3].mxu0 }
  0xe4   :  { %v299_v42 = vpop.f32.mrb[0].mxu1 }
  0xe5   :  { %v208_v16 = vadd.f32 %v4325_v12, %v199_v14  ;;  %v3537_v43 = vpop.f32.mrb[1].mxu1 }
  0xe7   :  { %4068 = vtanh.f32 %v208_v16  ;;  %v3285_v18 = vmul.f32 -1.442695, %v208_v16 }
  0xe9   :  { %4070 = vpow2.f32 %v3285_v18 }
  0xf1   :  { %v4069_v17 = vpop.eup %4068 }
  0xf2   :  { %218 = vrot.lane.b32.xlu0 %v4069_v17, %s4226_s22 }
  0xf3   :  { %v4071_v19 = vpop.eup %4070 }
  0xf4   :  { %v212_v20 = vadd.f32 1.0, %v4071_v19 }
  0xf6   :  { %4072 = vrcp.f32 %v212_v20 }
 0x100   :  { %v4073_v21 = vpop.eup %4072 }
 0x101   :  { %v216_v24 = vmul.f32 0.0, %v4073_v21 }
 0x164   :  { %v219_v22 = vpop.permute.xlu0 %218 }
 0x165   :  { %v221_v23 = vmul.f32 %v4073_v21, %v219_v22 }
 0x167   :  { %223 = vrot.lane.b32.xlu0 %v221_v23, %s4227_s23 }
 0x1d9   :  { %v224_v25 = vpop.permute.xlu0 %223 }
 0x1da   :  { %v4330_v26 = vadd.f32 %v224_v25, %v216_v24 }
 0x1dc   :  { %4074 = vtanh.f32 %v4330_v26 }
 0x1e6   :  { %v4075_v39 = vpop.eup %4074 }
 0x1e7   :  { %229 = vrot.lane.b32.xlu1 %v4075_v39, %s4226_s22 }
 0x259   :  { %v230_v40 = vpop.permute.xlu1 %229 }
 0x25a   :  { %v232_v41 = vmul.f32 %v4073_v21, %v230_v40 }
 0x25c   :  { %304 = vrot.lane.b32.xlu1 %v232_v41, %s4227_s23 }
 0x2ce   :  { %v305_v44 = vpop.permute.xlu1 %304 }
 0x2cf   :  { %3547 = vmatmul.mubr.msk.f32.vlgmr.msra.gmra.mrb[4].mxu0 %vm54_vm2, %v305_v44  ;;  %3558 = vmatmul.mubr.msk.f32.vlgmr.msra.gmra.mrb[2].mxu1 %vm54_vm2, %v305_v44 }
 0x2d0   :  { %3561 = vmatpush3.msra.mxu0 %v4309_v8  ;;  %3562 = vmatprep.mubr.msk.f32.mxu0 %vm4224_vm0, %v4225_v6 }
 0x2d1   :  { %3907 = vmatpush3.bf16.msra.mxu1 %v4342_v30  ;;  %3911 = vmatprep.subr.bf16.mxu0 %v4223_v3 }
 0x2d2   :  { %3908 = vmatprep.subr.bf16.mxu1 %v4223_v3  ;;  %3573 = vmatprep.mubr.msk.f32.mxu1 %vm4224_vm0, %v4225_v6 }
 0x2d3   :  { %3563 = vmatmul.mubr.msk.f32.vlgmr.msra.gmra.mrb[6].mxu0 %vm128_vm1, %v3289_v45 }
 0x2d4   :  { %3913 = vmatpush3.bf16.msra.mxu0 %v4353_v34  ;;  %3584 = vmatprep.mubr.msk.f32.mxu0 %vm4224_vm0, %v4225_v6 }
 0x2d5   :  { %3910 = vmatpush3.bf16.msra.mxu1 %v4362_v37  ;;  %3914 = vmatprep.subr.bf16.mxu0 %v4223_v3 }
 0x2d6   :  { %3917 = vmatprep.subr.bf16.mxu1 %v4223_v3 }
 0x2d8   :  { %3916 = vmatpush3.bf16.msra.mxu0 %v4366_v38 }
 0x2d9   :  { %3598 = vmatprep.subr.mxu0 %v4225_v6 }
 0x3a2   :  { %v374_v47 = vpop.f32.mrb[4].mxu0  ;;  %v477_v48 = vpop.f32.mrb[2].mxu1 }
 0x3a3   :  { %v375_v49 = vadd.f32 %v374_v47, %v299_v42  ;;  %v3548_v50 = vpop.f32.mrb[5].mxu0  ;;  %v3559_v51 = vpop.f32.mrb[3].mxu1 }
 0x3a5   :  { %v384_v52 = vadd.f32 %v4407_v46, %v375_v49 }
 0x3a6   :  { %v550_v53 = vpop.f32.mrb[6].mxu0 }
 0x3a7   :  { %4076 = vtanh.f32 %v384_v52  ;;  %v551_v54 = vadd.f32 %v550_v53, %v477_v48  ;;  %v3564_v55 = vpop.f32.mrb[7].mxu0  ;;  %v3288_v59 = vmul.f32 -1.442695, %v384_v52 }
 0x3a9   :  { %v554_v56 = vadd.f32 %v4325_v12, %v551_v54 }
 0x3ab   :  { %4078 = vtanh.f32 %v554_v56  ;;  %v3292_v60 = vmul.f32 -1.442695, %v554_v56 }
 0x3ac   :  { %4080 = vpow2.f32 %v3288_v59 }
 0x3ad   :  { %4082 = vpow2.f32 %v3292_v60 }
 0x3b1   :  { %v4077_v57 = vpop.eup %4076 }
 0x3b2   :  { %394 = vrot.lane.b32.xlu0 %v4077_v57, %s4226_s22 }
 0x3b5   :  { %v4079_v58 = vpop.eup %4078 }
 0x3b6   :  { %564 = vrot.lane.b32.xlu1 %v4079_v58, %s4226_s22  ;;  %v4081_v61 = vpop.eup %4080 }
 0x3b7   :  { %v388_v62 = vadd.f32 1.0, %v4081_v61  ;;  %v4083_v63 = vpop.eup %4082 }
 0x3b8   :  { %v558_v0 = vadd.f32 1.0, %v4083_v63 }
 0x3b9   :  { %4084 = vrcp.f32 %v388_v62 }
 0x3ba   :  { %4086 = vrcp.f32 %v558_v0 }
 0x3c3   :  { %v4085_v1 = vpop.eup %4084 }
 0x3c4   :  { %v4087_v9 = vpop.eup %4086  ;;  %v392_v13 = vmul.f32 0.0, %v4085_v1 }
 0x3c5   :  { %v562_v16 = vmul.f32 %v4087_v9, %v4330_v26 }
 0x424   :  { %v395_v2 = vpop.permute.xlu0 %394 }
 0x425   :  { %v397_v5 = vmul.f32 %v4085_v1, %v395_v2 }
 0x427   :  { %399 = vrot.lane.b32.xlu0 %v397_v5, %s4227_s23 }
 0x428   :  { %v565_v10 = vpop.permute.xlu1 %564 }
 0x429   :  { %v567_v11 = vmul.f32 %v4087_v9, %v565_v10 }
 0x42b   :  { %569 = vrot.lane.b32.xlu1 %v567_v11, %s4227_s23 }
 0x499   :  { %v400_v14 = vpop.permute.xlu0 %399 }
 0x49a   :  { %v4415_v15 = vadd.f32 %v400_v14, %v392_v13 }
 0x49c   :  { %4088 = vtanh.f32 %v4415_v15 }
 0x49d   :  { %v570_v17 = vpop.permute.xlu1 %569 }
 0x49e   :  { %v4419_v18 = vadd.f32 %v570_v17, %v562_v16 }
 0x4a0   :  { %4090 = vtanh.f32 %v4419_v18 }
 0x4a6   :  { %v4089_v19 = vpop.eup %4088 }
 0x4a7   :  { %405 = vrot.lane.b32.xlu0 %v4089_v19, %s4226_s22 }
 0x4aa   :  { %v4091_v20 = vpop.eup %4090 }
 0x4ab   :  { %575 = vrot.lane.b32.xlu1 %v4091_v20, %s4226_s22 }
 0x519   :  { %v406_v21 = vpop.permute.xlu0 %405 }
 0x51a   :  { %v408_v22 = vmul.f32 %v4085_v1, %v406_v21 }
 0x51c   :  { %580 = vrot.lane.b32.xlu0 %v408_v22, %s4227_s23 }
 0x51d   :  { %v576_v23 = vpop.permute.xlu1 %575 }
 0x51e   :  { %v578_v24 = vmul.f32 %v4087_v9, %v576_v23 }
 0x520   :  { %655 = vrot.lane.b32.xlu1 %v578_v24, %s4227_s23 }
 0x58e   :  { %v581_v25 = vpop.permute.xlu0 %580 }
 0x58f   :  { %3574 = vmatmul.mubr.msk.f32.vlgmr.msra.gmra.mrb[4].mxu1 %vm54_vm2, %v581_v25 }
 0x590   :  { %3919 = vmatpush3.bf16.msra.mxu1 %v4290_v4  ;;  %3595 = vmatprep.mubr.msk.f32.mxu1 %vm4224_vm0, %v4225_v6 }
 0x591   :  { %3920 = vmatprep.subr.bf16.mxu1 %v4223_v3 }
 0x592   :  { %v656_v26 = vpop.permute.xlu1 %655 }
 0x593   :  { %3585 = vmatmul.mubr.msk.f32.vlgmr.msra.gmra.mrb[8].mxu0 %vm54_vm2, %v656_v26 }
 0x594   :  { %3922 = vmatpush3.bf16.msra.mxu1 %v4301_v7  ;;  %3599 = vmatpush3.msra.mxu0 %v4309_v8 }
 0x595   :  { %3600 = vmatprep.mubr.msk.f32.mxu0 %vm4224_vm0, %v4225_v6  ;;  %3923 = vmatprep.subr.bf16.mxu0 %v4223_v3 }
 0x596   :  { %3929 = vmatprep.subr.bf16.mxu1 %v4223_v3 }
 0x597   :  { %3596 = vmatmul.mubr.msk.f32.vlgmr.msra.gmra.mrb[6].mxu1 %vm54_vm2, %v656_v26  ;;  %3601 = vmatmul.mubr.msk.f32.vlgmr.msra.gmra.mrb[10].mxu0 %vm128_vm1, %v3296_v27 }
 0x598   :  { %3925 = vmatpush3.bf16.msra.mxu0 %v4342_v30  ;;  %3931 = vmatpush3.bf16.msra.mxu1 %v4353_v34 }
 0x599   :  { %3926 = vmatprep.subr.bf16.mxu0 %v4223_v3  ;;  %3611 = vmatprep.mubr.msk.f32.mxu0 %vm4224_vm0, %v4225_v6 }
 0x59a   :  { %3932 = vmatprep.subr.bf16.mxu1 %v4223_v3  ;;  %3622 = vmatprep.mubr.msk.f32.mxu1 %vm4224_vm0, %v4225_v6 }
 0x59c   :  { %3928 = vmatpush3.bf16.msra.mxu0 %v4362_v37  ;;  %3934 = vmatpush3.bf16.msra.mxu1 %v4366_v38 }
 0x59d   :  { %3941 = vmatprep.subr.bf16.mxu1 %v4223_v3  ;;  %3935 = vmatprep.subr.bf16.mxu0 %v4223_v3 }
 0x662   :  { %v650_v28 = vpop.f32.mrb[4].mxu1 }
 0x663   :  { %v3575_v29 = vpop.f32.mrb[5].mxu1 }
 0x666   :  { %v725_v31 = vpop.f32.mrb[8].mxu0 }
 0x667   :  { %v726_v32 = vadd.f32 %v725_v31, %v650_v28  ;;  %v3586_v33 = vpop.f32.mrb[9].mxu0 }
 0x669   :  { %v729_v35 = vadd.f32 %v4407_v46, %v726_v32 }
 0x66a   :  { %v822_v36 = vpop.f32.mrb[6].mxu1  ;;  %v895_v39 = vpop.f32.mrb[10].mxu0 }
 0x66b   :  { %4092 = vtanh.f32 %v729_v35  ;;  %v3597_v40 = vpop.f32.mrb[7].mxu1  ;;  %v896_v41 = vadd.f32 %v895_v39, %v822_v36  ;;  %v3602_v42 = vpop.f32.mrb[11].mxu0  ;;  %v3295_v47 = vmul.f32 -1.442695, %v729_v35  ;;  %v33_v35 = vld [vmem:[%s4818_s7] sm:$0xff]  ;;  %v34_v36 = vld [vmem:[%s4818_s7 + $0x8] sm:$0xff] }
 0x66c   :  { %v35_v39 = vld [vmem:[%s4818_s7 + $0x10] sm:$0xff]  ;;  %v4502_v40 = vpack.c.bf16 %v34_v36, %v33_v35 }
 0x66d   :  { %v899_v43 = vadd.f32 %v4325_v12, %v896_v41  ;;  %v36_v41 = vld [vmem:[%s4818_s7 + $0x18] sm:$0xff] }
 0x66e   :  { %v4508_v42 = vpack.c.bf16 %v36_v41, %v35_v39 }
 0x66f   :  { %4094 = vtanh.f32 %v899_v43  ;;  %v3299_v48 = vmul.f32 -1.442695, %v899_v43 }
 0x670   :  { %4096 = vpow2.f32 %v3295_v47 }
 0x671   :  { %4098 = vpow2.f32 %v3299_v48  ;;  %v3305_v48 = vld [vmem:[%s4811_s0 + $0x6] sm:$0x3] }
 0x675   :  { %v4093_v44 = vpop.eup %4092 }
 0x676   :  { %739 = vrot.lane.b32.xlu0 %v4093_v44, %s4226_s22 }
 0x679   :  { %v4095_v45 = vpop.eup %4094 }
 0x67a   :  { %909 = vrot.lane.b32.xlu1 %v4095_v45, %s4226_s22  ;;  %v4097_v49 = vpop.eup %4096 }
 0x67b   :  { %v733_v50 = vadd.f32 1.0, %v4097_v49  ;;  %v4099_v51 = vpop.eup %4098  ;;  %v4540_v49 = vld [vmem:[%s4819_s8] ss:$0 sm:$0xff] }
 0x67c   :  { %v903_v52 = vadd.f32 1.0, %v4099_v51 }
 0x67d   :  { %4100 = vrcp.f32 %v733_v50 }
 0x67e   :  { %4102 = vrcp.f32 %v903_v52 }
 0x687   :  { %v4101_v53 = vpop.eup %4100 }
 0x688   :  { %v4103_v56 = vpop.eup %4102  ;;  %v737_v59 = vmul.f32 %v4101_v53, %v4415_v15 }
 0x689   :  { %v907_v62 = vmul.f32 %v4103_v56, %v4419_v18 }
 0x6e8   :  { %v740_v54 = vpop.permute.xlu0 %739 }
 0x6e9   :  { %v742_v55 = vmul.f32 %v4101_v53, %v740_v54 }
 0x6eb   :  { %744 = vrot.lane.b32.xlu0 %v742_v55, %s4227_s23 }
 0x6ec   :  { %v910_v57 = vpop.permute.xlu1 %909 }
 0x6ed   :  { %v912_v58 = vmul.f32 %v4103_v56, %v910_v57 }
 0x6ef   :  { %914 = vrot.lane.b32.xlu1 %v912_v58, %s4227_s23 }
 0x75d   :  { %v745_v60 = vpop.permute.xlu0 %744 }
 0x75e   :  { %v747_v61 = vadd.f32 %v745_v60, %v737_v59 }
 0x760   :  { %4104 = vtanh.f32 %v747_v61 }
 0x761   :  { %v915_v63 = vpop.permute.xlu1 %914 }
 0x762   :  { %v4463_v0 = vadd.f32 %v915_v63, %v907_v62 }
 0x764   :  { %4106 = vtanh.f32 %v4463_v0 }
 0x76a   :  { %v4105_v1 = vpop.eup %4104 }
 0x76b   :  { %750 = vrot.lane.b32.xlu0 %v4105_v1, %s4226_s22 }
 0x76e   :  { %v4107_v2 = vpop.eup %4106 }
 0x76f   :  { %920 = vrot.lane.b32.xlu1 %v4107_v2, %s4226_s22 }
 0x7dd   :  { %v751_v5 = vpop.permute.xlu0 %750 }
 0x7de   :  { %v753_v9 = vmul.f32 %v4101_v53, %v751_v5 }
 0x7e0   :  { %925 = vrot.lane.b32.xlu0 %v753_v9, %s4227_s23 }
 0x7e1   :  { %v921_v10 = vpop.permute.xlu1 %920 }
 0x7e2   :  { %v923_v11 = vmul.f32 %v4103_v56, %v921_v10 }
 0x7e4   :  { %1000 = vrot.lane.b32.xlu1 %v923_v11, %s4227_s23 }
 0x852   :  { %v926_v13 = vpop.permute.xlu0 %925 }
 0x853   :  { %3612 = vmatmul.mubr.msk.f32.vlgmr.msra.gmra.mrb[12].mxu0 %vm54_vm2, %v926_v13 }
 0x854   :  { %3633 = vmatprep.mubr.msk.f32.mxu0 %vm4224_vm0, %v4225_v6  ;;  %3937 = vmatpush3.bf16.msra.mxu0 %v4502_v40 }
 0x855   :  { %3938 = vmatprep.subr.bf16.mxu0 %v4223_v3 }
 0x856   :  { %v1001_v14 = vpop.permute.xlu1 %1000 }
 0x857   :  { %3623 = vmatmul.mubr.msk.f32.vlgmr.msra.gmra.mrb[8].mxu1 %vm54_vm2, %v1001_v14 }
 0x858   :  { %3943 = vmatpush3.bf16.msra.mxu1 %v4290_v4  ;;  %3644 = vmatprep.mubr.msk.f32.mxu1 %vm4224_vm0, %v4225_v6 }
 0x859   :  { %3944 = vmatprep.subr.bf16.mxu1 %v4223_v3  ;;  %3940 = vmatpush3.bf16.msra.mxu0 %v4508_v42 }
 0x85a   :  { %3647 = vmatprep.subr.mxu0 %v4225_v6 }
 0x85c   :  { %3946 = vmatpush3.bf16.msra.mxu1 %v4301_v7 }
 0x85d   :  { %3947 = vmatprep.subr.bf16.mxu1 %v4223_v3 }
 0x85f   :  { %3645 = vmatmul.mubr.msk.f32.vlgmr.msra.gmra.mrb[10].mxu1 %vm54_vm2, %v1001_v14 }
 0x860   :  { %3949 = vmatpush3.bf16.msra.mxu1 %v4342_v30  ;;  %3660 = vmatprep.mubr.msk.f32.mxu1 %vm4224_vm0, %v4225_v6 }
 0x861   :  { %3950 = vmatprep.subr.bf16.mxu1 %v4223_v3 }
 0x864   :  { %3952 = vmatpush3.bf16.msra.mxu1 %v4362_v37 }
 0x865   :  { %3959 = vmatprep.subr.bf16.mxu1 %v4223_v3 }
 0x926   :  { %v995_v15 = vpop.f32.mrb[12].mxu0 }
 0x927   :  { %v3613_v16 = vpop.f32.mrb[13].mxu0 }
 0x92a   :  { %v1070_v17 = vpop.f32.mrb[8].mxu1 }
 0x92b   :  { %v1071_v18 = vadd.f32 %v1070_v17, %v995_v15  ;;  %v3624_v19 = vpop.f32.mrb[9].mxu1 }
 0x92d   :  { %v1074_v20 = vadd.f32 %v4407_v46, %v1071_v18 }
 0x92f   :  { %4108 = vtanh.f32 %v1074_v20  ;;  %v3302_v24 = vmul.f32 -1.442695, %v1074_v20 }
 0x931   :  { %4110 = vpow2.f32 %v3302_v24 }
 0x932   :  { %v1250_v21 = vpop.f32.mrb[10].mxu1 }
 0x933   :  { %v3646_v22 = vpop.f32.mrb[11].mxu1 }
 0x939   :  { %v4109_v23 = vpop.eup %4108 }
 0x93a   :  { %1084 = vrot.lane.b32.xlu0 %v4109_v23, %s4226_s22 }
 0x93b   :  { %v4111_v25 = vpop.eup %4110 }
 0x93c   :  { %v1078_v26 = vadd.f32 1.0, %v4111_v25 }
 0x93e   :  { %4112 = vrcp.f32 %v1078_v26 }
 0x948   :  { %v4113_v27 = vpop.eup %4112 }
 0x949   :  { %v1082_v31 = vmul.f32 %v4113_v27, %v747_v61 }
 0x9ac   :  { %v1085_v28 = vpop.permute.xlu0 %1084 }
 0x9ad   :  { %v1087_v29 = vmul.f32 %v4113_v27, %v1085_v28 }
 0x9af   :  { %1089 = vrot.lane.b32.xlu1 %v1087_v29, %s4227_s23 }
 0xa21   :  { %v1090_v32 = vpop.permute.xlu1 %1089 }
 0xa22   :  { %v4490_v33 = vadd.f32 %v1090_v32, %v1082_v31 }
 0xa24   :  { %4114 = vtanh.f32 %v4490_v33 }
 0xa2e   :  { %v4115_v43 = vpop.eup %4114 }
 0xa2f   :  { %1095 = vrot.lane.b32.xlu0 %v4115_v43, %s4226_s22 }
 0xaa1   :  { %v1096_v44 = vpop.permute.xlu0 %1095 }
 0xaa2   :  { %v1098_v45 = vmul.f32 %v4113_v27, %v1096_v44 }
 0xaa4   :  { %1106 = vrot.lane.b32.xlu1 %v1098_v45, %s4227_s23 }
 0xb16   :  { %v1107_v47 = vpop.permute.xlu1 %1106 }
 0xb17   :  { %3634 = vmatmul.mubr.msk.f32.vlgmr.msra.gmra.mrb[14].mxu0 %vm54_vm2, %v1107_v47  ;;  %3661 = vmatmul.mubr.msk.f32.vlgmr.msra.gmra.mrb[12].mxu1 %vm54_vm2, %v1107_v47 }
 0xb18   :  { %3648 = vmatpush3.msra.mxu0 %v4309_v8  ;;  %3649 = vmatprep.mubr.msk.f32.mxu0 %vm4224_vm0, %v4225_v6 }
 0xb19   :  { %3953 = vmatprep.subr.bf16.mxu0 %v4223_v3  ;;  %3961 = vmatpush3.bf16.msra.mxu1 %v4502_v40 }
 0xb1a   :  { %3962 = vmatprep.subr.bf16.mxu1 %v4223_v3  ;;  %3682 = vmatprep.mubr.msk.f32.mxu1 %vm4224_vm0, %v4225_v6 }
 0xb1b   :  { %3650 = vmatmul.mubr.msk.f32.vlgmr.msra.gmra.mrb[16].mxu0 %vm128_vm1, %v3305_v48 }
 0xb1c   :  { %3955 = vmatpush3.bf16.msra.mxu0 %v4353_v34  ;;  %3671 = vmatprep.mubr.msk.f32.mxu0 %vm4224_vm0, %v4225_v6 }
 0xb1d   :  { %3956 = vmatprep.subr.bf16.mxu0 %v4223_v3  ;;  %3964 = vmatpush3.bf16.msra.mxu1 %v4508_v42 }
 0xb1e   :  { %3696 = vmatprep.subr.mxu1 %v4225_v6 }
 0xb20   :  { %3958 = vmatpush3.bf16.msra.mxu0 %v4366_v38 }
 0xb21   :  { %3965 = vmatprep.subr.bf16.mxu0 %v4223_v3 }
 0xbea   :  { %v1176_v50 = vpop.f32.mrb[14].mxu0  ;;  %v1418_v51 = vpop.f32.mrb[12].mxu1 }
 0xbeb   :  { %v1177_v52 = vadd.f32 %v4540_v49, %v1176_v50  ;;  %v3635_v53 = vpop.f32.mrb[15].mxu0  ;;  %v3662_v54 = vpop.f32.mrb[13].mxu1 }
 0xbed   :  { %1181 = vst.msk [vmem:[#allocation2] sm:$0x3] %vm1180_vm3, %v1177_v52 }
 0xbee   :  { %v1323_v55 = vpop.f32.mrb[16].mxu0 }
 0xbef   :  { %v1324_v56 = vadd.f32 %v1323_v55, %v1250_v21  ;;  %v3651_v57 = vpop.f32.mrb[17].mxu0 }
 0xbf1   :  { %v1327_v58 = vadd.f32 %v4325_v12, %v1324_v56 }
 0xbf3   :  { %4116 = vtanh.f32 %v1327_v58  ;;  %v3308_v60 = vmul.f32 -1.442695, %v1327_v58 }
 0xbf5   :  { %4118 = vpow2.f32 %v3308_v60 }
 0xbfd   :  { %v4117_v59 = vpop.eup %4116 }
 0xbfe   :  { %1337 = vrot.lane.b32.xlu0 %v4117_v59, %s4226_s22 }
 0xbff   :  { %v4119_v61 = vpop.eup %4118 }
 0xc00   :  { %v1331_v62 = vadd.f32 1.0, %v4119_v61 }
 0xc02   :  { %4120 = vrcp.f32 %v1331_v62 }
 0xc0c   :  { %v4121_v63 = vpop.eup %4120 }
 0xc0d   :  { %v1335_v5 = vmul.f32 %v4121_v63, %v4463_v0 }
 0xc70   :  { %v1338_v1 = vpop.permute.xlu0 %1337 }
 0xc71   :  { %v1340_v2 = vmul.f32 %v4121_v63, %v1338_v1 }
 0xc73   :  { %1342 = vrot.lane.b32.xlu1 %v1340_v2, %s4227_s23 }
 0xce5   :  { %v1343_v9 = vpop.permute.xlu1 %1342 }
 0xce6   :  { %v4548_v10 = vadd.f32 %v1343_v9, %v1335_v5 }
 0xce8   :  { %4122 = vtanh.f32 %v4548_v10 }
 0xcf2   :  { %v4123_v11 = vpop.eup %4122 }
 0xcf3   :  { %1348 = vrot.lane.b32.xlu0 %v4123_v11, %s4226_s22 }
 0xd65   :  { %v1349_v13 = vpop.permute.xlu0 %1348 }
 0xd66   :  { %v1351_v14 = vmul.f32 %v4121_v63, %v1349_v13 }
 0xd68   :  { %1423 = vrot.lane.b32.xlu1 %v1351_v14, %s4227_s23 }
 0xdda   :  { %v1424_v15 = vpop.permute.xlu1 %1423 }
 0xddb   :  { %3672 = vmatmul.mubr.msk.f32.vlgmr.msra.gmra.mrb[18].mxu0 %vm54_vm2, %v1424_v15 }
 0xddc   :  { %3967 = vmatpush3.bf16.msra.mxu0 %v4290_v4  ;;  %3693 = vmatprep.mubr.msk.f32.mxu0 %vm4224_vm0, %v4225_v6 }
 0xddd   :  { %3968 = vmatprep.subr.bf16.mxu0 %v4223_v3 }
 0xde0   :  { %3970 = vmatpush3.bf16.msra.mxu0 %v4301_v7 }
 0xde1   :  { %3971 = vmatprep.subr.bf16.mxu0 %v4223_v3 }
 0xde3   :  { %3694 = vmatmul.mubr.msk.f32.vlgmr.msra.gmra.mrb[20].mxu0 %vm54_vm2, %v1424_v15 }
 0xde4   :  { %3973 = vmatpush3.bf16.msra.mxu0 %v4342_v30  ;;  %3709 = vmatprep.mubr.msk.f32.mxu0 %vm4224_vm0, %v4225_v6 }
 0xde5   :  { %3974 = vmatprep.subr.bf16.mxu0 %v4223_v3 }
 0xde8   :  { %3976 = vmatpush3.bf16.msra.mxu0 %v4362_v37 }
 0xde9   :  { %3983 = vmatprep.subr.bf16.mxu0 %v4223_v3 }
 0xeae   :  { %v1493_v0 = vpop.f32.mrb[18].mxu0 }
 0xeaf   :  { %v1494_v16 = vadd.f32 %v1493_v0, %v1418_v51  ;;  %v3673_v17 = vpop.f32.mrb[19].mxu0 }
 0xeb1   :  { %v1497_v18 = vadd.f32 %v4407_v46, %v1494_v16 }
 0xeb3   :  { %4124 = vtanh.f32 %v1497_v18  ;;  %v3311_v22 = vmul.f32 -1.442695, %v1497_v18 }
 0xeb5   :  { %4126 = vpow2.f32 %v3311_v22 }
 0xeb6   :  { %v1667_v19 = vpop.f32.mrb[20].mxu0 }
 0xeb7   :  { %v3695_v20 = vpop.f32.mrb[21].mxu0 }
 0xebd   :  { %v4125_v21 = vpop.eup %4124 }
 0xebe   :  { %1507 = vrot.lane.b32.xlu0 %v4125_v21, %s4226_s22 }
 0xebf   :  { %v4127_v23 = vpop.eup %4126 }
 0xec0   :  { %v1501_v24 = vadd.f32 1.0, %v4127_v23 }
 0xec2   :  { %4128 = vrcp.f32 %v1501_v24 }
 0xecc   :  { %v4129_v25 = vpop.eup %4128 }
 0xecd   :  { %v1505_v28 = vmul.f32 %v4129_v25, %v4490_v33  ;;  %v3313_v33 = vld [vmem:[%s4811_s0 + $0x8] sm:$0x3] }
 0xf30   :  { %v1508_v26 = vpop.permute.xlu0 %1507 }
 0xf31   :  { %v1510_v27 = vmul.f32 %v4129_v25, %v1508_v26 }
 0xf33   :  { %1512 = vrot.lane.b32.xlu1 %v1510_v27, %s4227_s23 }
 0xfa5   :  { %v1513_v29 = vpop.permute.xlu1 %1512 }
 0xfa6   :  { %v4571_v31 = vadd.f32 %v1513_v29, %v1505_v28  ;;  %v3321_v29 = vld [vmem:[%s4811_s0 + $0xa] sm:$0x3] }
 0xfa8   :  { %4130 = vtanh.f32 %v4571_v31 }
 0xfb2   :  { %v4131_v32 = vpop.eup %4130 }
 0xfb3   :  { %1518 = vrot.lane.b32.xlu0 %v4131_v32, %s4226_s22 }
0x1025   :  { %v1519_v35 = vpop.permute.xlu0 %1518 }
0x1026   :  { %v1521_v36 = vmul.f32 %v4129_v25, %v1519_v35 }
0x1028   :  { %1523 = vrot.lane.b32.xlu1 %v1521_v36, %s4227_s23 }
0x109a   :  { %v1524_v39 = vpop.permute.xlu1 %1523 }
0x109b   :  { %3683 = vmatmul.mubr.msk.f32.vlgmr.msra.gmra.mrb[14].mxu1 %vm54_vm2, %v1524_v39  ;;  %3710 = vmatmul.mubr.msk.f32.vlgmr.msra.gmra.mrb[22].mxu0 %vm54_vm2, %v1524_v39 }
0x109c   :  { %3697 = vmatpush3.msra.mxu1 %v4309_v8  ;;  %3698 = vmatprep.mubr.msk.f32.mxu1 %vm4224_vm0, %v4225_v6 }
0x109d   :  { %3977 = vmatprep.subr.bf16.mxu1 %v4223_v3  ;;  %3985 = vmatpush3.bf16.msra.mxu0 %v4502_v40 }
0x109e   :  { %3986 = vmatprep.subr.bf16.mxu0 %v4223_v3  ;;  %3731 = vmatprep.mubr.msk.f32.mxu0 %vm4224_vm0, %v4225_v6 }
0x109f   :  { %3699 = vmatmul.mubr.msk.f32.vlgmr.msra.gmra.mrb[16].mxu1 %vm128_vm1, %v3313_v33 }
0x10a0   :  { %3979 = vmatpush3.bf16.msra.mxu1 %v4353_v34  ;;  %3720 = vmatprep.mubr.msk.f32.mxu1 %vm4224_vm0, %v4225_v6 }
0x10a1   :  { %3980 = vmatprep.subr.bf16.mxu1 %v4223_v3  ;;  %3988 = vmatpush3.bf16.msra.mxu0 %v4508_v42 }
0x10a2   :  { %3745 = vmatprep.subr.mxu0 %v4225_v6 }
0x10a4   :  { %3982 = vmatpush3.bf16.msra.mxu1 %v4366_v38 }
0x10a5   :  { %3989 = vmatprep.subr.bf16.mxu1 %v4223_v3 }
0x116e   :  { %v1593_v41 = vpop.f32.mrb[14].mxu1  ;;  %v1835_v43 = vpop.f32.mrb[22].mxu0 }
0x116f   :  { %v1594_v44 = vadd.f32 %v4540_v49, %v1593_v41  ;;  %v3684_v45 = vpop.f32.mrb[15].mxu1  ;;  %v3711_v47 = vpop.f32.mrb[23].mxu0 }
0x1171   :  { %1598 = vst.msk [vmem:[#allocation2 + $0x2] sm:$0x3] %vm1180_vm3, %v1594_v44 }
0x1172   :  { %v1740_v48 = vpop.f32.mrb[16].mxu1 }
0x1173   :  { %v1741_v50 = vadd.f32 %v1740_v48, %v1667_v19  ;;  %v3700_v51 = vpop.f32.mrb[17].mxu1 }
0x1175   :  { %v1744_v52 = vadd.f32 %v4325_v12, %v1741_v50 }
0x1177   :  { %4132 = vtanh.f32 %v1744_v52  ;;  %v3316_v54 = vmul.f32 -1.442695, %v1744_v52 }
0x1179   :  { %4134 = vpow2.f32 %v3316_v54 }
0x1181   :  { %v4133_v53 = vpop.eup %4132 }
0x1182   :  { %1754 = vrot.lane.b32.xlu0 %v4133_v53, %s4226_s22 }
0x1183   :  { %v4135_v55 = vpop.eup %4134 }
0x1184   :  { %v1748_v56 = vadd.f32 1.0, %v4135_v55 }
0x1186   :  { %4136 = vrcp.f32 %v1748_v56 }
0x1190   :  { %v4137_v57 = vpop.eup %4136 }
0x1191   :  { %v1752_v60 = vmul.f32 %v4137_v57, %v4548_v10 }
0x11f4   :  { %v1755_v58 = vpop.permute.xlu0 %1754 }
0x11f5   :  { %v1757_v59 = vmul.f32 %v4137_v57, %v1755_v58 }
0x11f7   :  { %1759 = vrot.lane.b32.xlu1 %v1757_v59, %s4227_s23 }
0x1269   :  { %v1760_v61 = vpop.permute.xlu1 %1759 }
0x126a   :  { %v4604_v62 = vadd.f32 %v1760_v61, %v1752_v60 }
0x126c   :  { %4138 = vtanh.f32 %v4604_v62 }
0x1276   :  { %v4139_v63 = vpop.eup %4138 }
0x1277   :  { %1765 = vrot.lane.b32.xlu0 %v4139_v63, %s4226_s22 }
0x12e9   :  { %v1766_v1 = vpop.permute.xlu0 %1765 }
0x12ea   :  { %v1768_v2 = vmul.f32 %v4137_v57, %v1766_v1 }
0x12ec   :  { %1840 = vrot.lane.b32.xlu1 %v1768_v2, %s4227_s23 }
0x135e   :  { %v1841_v5 = vpop.permute.xlu1 %1840 }
0x135f   :  { %3721 = vmatmul.mubr.msk.f32.vlgmr.msra.gmra.mrb[18].mxu1 %vm54_vm2, %v1841_v5 }
0x1360   :  { %3991 = vmatpush3.bf16.msra.mxu1 %v4290_v4  ;;  %3742 = vmatprep.mubr.msk.f32.mxu1 %vm4224_vm0, %v4225_v6 }
0x1361   :  { %3992 = vmatprep.subr.bf16.mxu1 %v4223_v3 }
0x1364   :  { %3994 = vmatpush3.bf16.msra.mxu1 %v4301_v7 }
0x1365   :  { %3995 = vmatprep.subr.bf16.mxu1 %v4223_v3 }
0x1367   :  { %3743 = vmatmul.mubr.msk.f32.vlgmr.msra.gmra.mrb[20].mxu1 %vm54_vm2, %v1841_v5 }
0x1368   :  { %3997 = vmatpush3.bf16.msra.mxu1 %v4342_v30  ;;  %3758 = vmatprep.mubr.msk.f32.mxu1 %vm4224_vm0, %v4225_v6 }
0x1369   :  { %3998 = vmatprep.subr.bf16.mxu1 %v4223_v3 }
0x136c   :  { %4000 = vmatpush3.bf16.msra.mxu1 %v4362_v37 }
0x136d   :  { %4007 = vmatprep.subr.bf16.mxu1 %v4223_v3 }
0x1432   :  { %v1910_v9 = vpop.f32.mrb[18].mxu1 }
0x1433   :  { %v1911_v10 = vadd.f32 %v1910_v9, %v1835_v43  ;;  %v3722_v11 = vpop.f32.mrb[19].mxu1 }
0x1435   :  { %v1914_v13 = vadd.f32 %v4407_v46, %v1911_v10 }
0x1437   :  { %4140 = vtanh.f32 %v1914_v13  ;;  %v3319_v16 = vmul.f32 -1.442695, %v1914_v13 }
0x1439   :  { %4142 = vpow2.f32 %v3319_v16 }
0x143a   :  { %v2084_v14 = vpop.f32.mrb[20].mxu1 }
0x143b   :  { %v3744_v15 = vpop.f32.mrb[21].mxu1 }
0x1441   :  { %v4141_v0 = vpop.eup %4140 }
0x1442   :  { %1924 = vrot.lane.b32.xlu0 %v4141_v0, %s4226_s22 }
0x1443   :  { %v4143_v17 = vpop.eup %4142 }
0x1444   :  { %v1918_v18 = vadd.f32 1.0, %v4143_v17 }
0x1446   :  { %4144 = vrcp.f32 %v1918_v18 }
0x1450   :  { %v4145_v19 = vpop.eup %4144 }
0x1451   :  { %v1922_v22 = vmul.f32 %v4145_v19, %v4571_v31 }
0x14b4   :  { %v1925_v20 = vpop.permute.xlu0 %1924 }
0x14b5   :  { %v1927_v21 = vmul.f32 %v4145_v19, %v1925_v20  ;;  %v4693_v20 = vld [vmem:[%s4812_s1] sm:$0xff] }
0x14b7   :  { %1929 = vrot.lane.b32.xlu1 %v1927_v21, %s4227_s23  ;;  %v3329_v21 = vld [vmem:[%s4811_s0 + $0xc] sm:$0x3] }
0x1529   :  { %v1930_v23 = vpop.permute.xlu1 %1929 }
0x152a   :  { %v4627_v24 = vadd.f32 %v1930_v23, %v1922_v22 }
0x152c   :  { %4146 = vtanh.f32 %v4627_v24 }
0x1536   :  { %v4147_v25 = vpop.eup %4146 }
0x1537   :  { %1935 = vrot.lane.b32.xlu0 %v4147_v25, %s4226_s22 }
0x15a9   :  { %v1936_v26 = vpop.permute.xlu0 %1935 }
0x15aa   :  { %v1938_v27 = vmul.f32 %v4145_v19, %v1936_v26 }
0x15ac   :  { %1940 = vrot.lane.b32.xlu1 %v1938_v27, %s4227_s23 }
0x161e   :  { %v1941_v28 = vpop.permute.xlu1 %1940 }
0x161f   :  { %3732 = vmatmul.mubr.msk.f32.vlgmr.msra.gmra.mrb[24].mxu0 %vm54_vm2, %v1941_v28  ;;  %3759 = vmatmul.mubr.msk.f32.vlgmr.msra.gmra.mrb[22].mxu1 %vm54_vm2, %v1941_v28 }
0x1620   :  { %3746 = vmatpush3.msra.mxu0 %v4309_v8  ;;  %3747 = vmatprep.mubr.msk.f32.mxu0 %vm4224_vm0, %v4225_v6 }
0x1621   :  { %4001 = vmatprep.subr.bf16.mxu0 %v4223_v3  ;;  %4009 = vmatpush3.bf16.msra.mxu1 %v4502_v40 }
0x1622   :  { %4010 = vmatprep.subr.bf16.mxu1 %v4223_v3  ;;  %3780 = vmatprep.mubr.msk.f32.mxu1 %vm4224_vm0, %v4225_v6 }
0x1623   :  { %3748 = vmatmul.mubr.msk.f32.vlgmr.msra.gmra.mrb[26].mxu0 %vm128_vm1, %v3321_v29 }
0x1624   :  { %4003 = vmatpush3.bf16.msra.mxu0 %v4353_v34  ;;  %3769 = vmatprep.mubr.msk.f32.mxu0 %vm4224_vm0, %v4225_v6 }
0x1625   :  { %4004 = vmatprep.subr.bf16.mxu0 %v4223_v3  ;;  %4012 = vmatpush3.bf16.msra.mxu1 %v4508_v42 }
0x1626   :  { %3794 = vmatprep.subr.mxu1 %v4225_v6 }
0x1628   :  { %4006 = vmatpush3.bf16.msra.mxu0 %v4366_v38 }
0x1629   :  { %4013 = vmatprep.subr.bf16.mxu0 %v4223_v3 }
0x16f2   :  { %v2010_v8 = vpop.f32.mrb[24].mxu0  ;;  %v2252_v31 = vpop.f32.mrb[22].mxu1 }
0x16f3   :  { %v2011_v32 = vadd.f32 %v4540_v49, %v2010_v8  ;;  %v3733_v35 = vpop.f32.mrb[25].mxu0  ;;  %v3760_v36 = vpop.f32.mrb[23].mxu1  ;;  %v4720_v8 = vld [vmem:[%s4814_s3] ss:$0 sm:$0xff] }
0x16f5   :  { %2015 = vst.msk [vmem:[#allocation2 + $0x4] sm:$0x3] %vm1180_vm3, %v2011_v32 }
0x16f6   :  { %v2157_v39 = vpop.f32.mrb[26].mxu0 }
0x16f7   :  { %v2158_v33 = vadd.f32 %v2157_v39, %v2084_v14  ;;  %v3749_v41 = vpop.f32.mrb[27].mxu0 }
0x16f9   :  { %v2161_v43 = vadd.f32 %v4325_v12, %v2158_v33 }
0x16fb   :  { %4148 = vtanh.f32 %v2161_v43  ;;  %v3324_v45 = vmul.f32 -1.442695, %v2161_v43 }
0x16fd   :  { %4150 = vpow2.f32 %v3324_v45 }
0x1705   :  { %v4149_v44 = vpop.eup %4148 }
0x1706   :  { %2171 = vrot.lane.b32.xlu0 %v4149_v44, %s4226_s22 }
0x1707   :  { %v4151_v47 = vpop.eup %4150 }
0x1708   :  { %v2165_v48 = vadd.f32 1.0, %v4151_v47 }
0x170a   :  { %4152 = vrcp.f32 %v2165_v48 }
0x1714   :  { %v4153_v50 = vpop.eup %4152 }
0x1715   :  { %v2169_v53 = vmul.f32 %v4153_v50, %v4604_v62 }
0x1778   :  { %v2172_v51 = vpop.permute.xlu0 %2171 }
0x1779   :  { %v2174_v52 = vmul.f32 %v4153_v50, %v2172_v51 }
0x177b   :  { %2176 = vrot.lane.b32.xlu1 %v2174_v52, %s4227_s23 }
0x17ed   :  { %v2177_v54 = vpop.permute.xlu1 %2176 }
0x17ee   :  { %v4660_v55 = vadd.f32 %v2177_v54, %v2169_v53 }
0x17f0   :  { %4154 = vtanh.f32 %v4660_v55 }
0x17fa   :  { %v4155_v12 = vpop.eup %4154 }
0x17fb   :  { %2182 = vrot.lane.b32.xlu0 %v4155_v12, %s4226_s22 }
0x186d   :  { %v2183_v56 = vpop.permute.xlu0 %2182 }
0x186e   :  { %v2185_v57 = vmul.f32 %v4153_v50, %v2183_v56 }
0x1870   :  { %2257 = vrot.lane.b32.xlu1 %v2185_v57, %s4227_s23 }
0x18e2   :  { %v2258_v58 = vpop.permute.xlu1 %2257 }
0x18e3   :  { %3770 = vmatmul.mubr.msk.f32.vlgmr.msra.gmra.mrb[28].mxu0 %vm54_vm2, %v2258_v58 }
0x18e4   :  { %4015 = vmatpush3.bf16.msra.mxu0 %v4290_v4  ;;  %3791 = vmatprep.mubr.msk.f32.mxu0 %vm4224_vm0, %v4225_v6 }
0x18e5   :  { %4016 = vmatprep.subr.bf16.mxu0 %v4223_v3 }
0x18e8   :  { %4018 = vmatpush3.bf16.msra.mxu0 %v4301_v7 }
0x18e9   :  { %4019 = vmatprep.subr.bf16.mxu0 %v4223_v3 }
0x18eb   :  { %3792 = vmatmul.mubr.msk.f32.vlgmr.msra.gmra.mrb[30].mxu0 %vm54_vm2, %v2258_v58 }
0x18ec   :  { %4021 = vmatpush3.bf16.msra.mxu0 %v4342_v30  ;;  %3807 = vmatprep.mubr.msk.f32.mxu0 %vm4224_vm0, %v4225_v6 }
0x18ed   :  { %4022 = vmatprep.subr.bf16.mxu0 %v4223_v3 }
0x18f0   :  { %4024 = vmatpush3.bf16.msra.mxu0 %v4362_v37 }
0x18f1   :  { %4031 = vmatprep.subr.bf16.mxu0 %v4223_v3 }
0x19b6   :  { %v2327_v59 = vpop.f32.mrb[28].mxu0 }
0x19b7   :  { %v2328_v60 = vadd.f32 %v2327_v59, %v2252_v31  ;;  %v3771_v61 = vpop.f32.mrb[29].mxu0 }
0x19b9   :  { %v2331_v62 = vadd.f32 %v4407_v46, %v2328_v60 }
0x19bb   :  { %4156 = vtanh.f32 %v2331_v62  ;;  %v3327_v5 = vmul.f32 -1.442695, %v2331_v62 }
0x19bd   :  { %4158 = vpow2.f32 %v3327_v5 }
0x19be   :  { %v2501_v63 = vpop.f32.mrb[30].mxu0 }
0x19bf   :  { %v3793_v1 = vpop.f32.mrb[31].mxu0 }
0x19c5   :  { %v4157_v2 = vpop.eup %4156 }
0x19c6   :  { %2341 = vrot.lane.b32.xlu0 %v4157_v2, %s4226_s22 }
0x19c7   :  { %v4159_v9 = vpop.eup %4158 }
0x19c8   :  { %v2335_v10 = vadd.f32 1.0, %v4159_v9 }
0x19ca   :  { %4160 = vrcp.f32 %v2335_v10 }
0x19d4   :  { %v4161_v11 = vpop.eup %4160 }
0x19d5   :  { %v2339_v15 = vmul.f32 %v4161_v11, %v4627_v24 }
0x1a38   :  { %v2342_v13 = vpop.permute.xlu0 %2341 }
0x1a39   :  { %v2344_v14 = vmul.f32 %v4161_v11, %v2342_v13 }
0x1a3b   :  { %2346 = vrot.lane.b32.xlu1 %v2344_v14, %s4227_s23 }
0x1aad   :  { %v2347_v0 = vpop.permute.xlu1 %2346 }
0x1aae   :  { %v4683_v46 = vadd.f32 %v2347_v0, %v2339_v15 }
0x1ab0   :  { %4162 = vtanh.f32 %v4683_v46 }
0x1aba   :  { %v4163_v16 = vpop.eup %4162 }
0x1abb   :  { %2352 = vrot.lane.b32.xlu0 %v4163_v16, %s4226_s22 }
0x1b2d   :  { %v2353_v17 = vpop.permute.xlu0 %2352 }
0x1b2e   :  { %v2355_v18 = vmul.f32 %v4161_v11, %v2353_v17  ;;  %v3337_v11 = vld [vmem:[%s4811_s0 + $0xe] sm:$0x3]  ;;  %s4228_s0 = smov [#allocation2]  }
0x1b2f   :  { %s3272_s21 = sshll.u32 %s4228_s0, 4  ;;  %s3273_s21 = int_to_ptr.vmem [resolvable:$true] %s3272_s21 }
0x1b30   :  { %2357 = vrot.lane.b32.xlu1 %v2355_v18, %s4227_s23  ;;  %s4199_s24 = scalar_lea.vmem %s3273_s21, 192  ;;  %p4204_p1 = scmp.lt.s32.totalorder %s3273_s21, %s3273_s21 }
0x1b31   :  { %p4200_p0 = scmp.ne.s32.totalorder %s3273_s21, %s4199_s24  ;;  %p4205_p2 = scmp.lt.s32.totalorder %s4199_s24, %s4199_s24 }
0x1b33   :  { %p4206_p3 = por %p4205_p2, %p4204_p1 }
0x1b35   :  { %p4207_p4 = pnand %p4206_p3, %p4200_p0 }
0x1ba2   :  { %v2358_v19 = vpop.permute.xlu1 %2357 }
0x1ba3   :  { %3781 = vmatmul.mubr.msk.f32.vlgmr.msra.gmra.mrb[24].mxu1 %vm54_vm2, %v2358_v19  ;;  %3808 = vmatmul.mubr.msk.f32.vlgmr.msra.gmra.mrb[32].mxu0 %vm54_vm2, %v2358_v19 }
0x1ba4   :  { %3795 = vmatpush3.msra.mxu1 %v4693_v20  ;;  %3796 = vmatprep.mubr.msk.f32.mxu1 %vm4224_vm0, %v4225_v6 }
0x1ba5   :  { %4025 = vmatprep.subr.bf16.mxu1 %v4223_v3  ;;  %4033 = vmatpush3.bf16.msra.mxu0 %v4502_v40 }
0x1ba6   :  { %4034 = vmatprep.subr.bf16.mxu0 %v4223_v3  ;;  %3829 = vmatprep.mubr.msk.f32.mxu0 %vm4224_vm0, %v4225_v6 }
0x1ba7   :  { %3797 = vmatmul.mubr.msk.f32.vlgmr.msra.gmra.mrb[26].mxu1 %vm128_vm1, %v3329_v21 }
0x1ba8   :  { %4027 = vmatpush3.bf16.msra.mxu1 %v4353_v34  ;;  %3818 = vmatprep.mubr.msk.f32.mxu1 %vm4224_vm0, %v4225_v6 }
0x1ba9   :  { %4028 = vmatprep.subr.bf16.mxu1 %v4223_v3  ;;  %4036 = vmatpush3.bf16.msra.mxu0 %v4508_v42 }
0x1baa   :  { %3843 = vmatprep.subr.mxu0 %v4225_v6 }
0x1bac   :  { %4030 = vmatpush3.bf16.msra.mxu1 %v4366_v38 }
0x1bad   :  { %4037 = vmatprep.subr.bf16.mxu1 %v4223_v3 }
0x1c76   :  { %v2427_v22 = vpop.f32.mrb[24].mxu1  ;;  %v2669_v23 = vpop.f32.mrb[32].mxu0 }
0x1c77   :  { %v2428_v24 = vadd.f32 %v4540_v49, %v2427_v22  ;;  %v3782_v25 = vpop.f32.mrb[25].mxu1  ;;  %v3809_v26 = vpop.f32.mrb[33].mxu0 }
0x1c79   :  { %2432 = vst.msk [vmem:[#allocation2 + $0x6] sm:$0x3] %vm1180_vm3, %v2428_v24 }
0x1c7a   :  { %v2574_v27 = vpop.f32.mrb[26].mxu1 }
0x1c7b   :  { %v2575_v28 = vadd.f32 %v2574_v27, %v2501_v63  ;;  %v3798_v29 = vpop.f32.mrb[27].mxu1 }
0x1c7d   :  { %v2578_v31 = vadd.f32 %v4720_v8, %v2575_v28 }
0x1c7f   :  { %4164 = vtanh.f32 %v2578_v31  ;;  %v3332_v35 = vmul.f32 -1.442695, %v2578_v31 }
0x1c81   :  { %4166 = vpow2.f32 %v3332_v35 }
0x1c89   :  { %v4165_v32 = vpop.eup %4164 }
0x1c8a   :  { %2588 = vrot.lane.b32.xlu0 %v4165_v32, %s4226_s22 }
0x1c8b   :  { %v4167_v36 = vpop.eup %4166 }
0x1c8c   :  { %v2582_v39 = vadd.f32 1.0, %v4167_v36 }
0x1c8e   :  { %4168 = vrcp.f32 %v2582_v39 }
0x1c98   :  { %v4169_v33 = vpop.eup %4168 }
0x1c99   :  { %v2586_v44 = vmul.f32 %v4169_v33, %v4660_v55 }
0x1cfc   :  { %v2589_v41 = vpop.permute.xlu0 %2588 }
0x1cfd   :  { %v2591_v43 = vmul.f32 %v4169_v33, %v2589_v41 }
0x1cff   :  { %2593 = vrot.lane.b32.xlu1 %v2591_v43, %s4227_s23 }
0x1d71   :  { %v2594_v45 = vpop.permute.xlu1 %2593 }
0x1d72   :  { %v4726_v47 = vadd.f32 %v2594_v45, %v2586_v44 }
0x1d74   :  { %4170 = vtanh.f32 %v4726_v47 }
0x1d7e   :  { %v4171_v48 = vpop.eup %4170 }
0x1d7f   :  { %2599 = vrot.lane.b32.xlu0 %v4171_v48, %s4226_s22 }
0x1df1   :  { %v2600_v50 = vpop.permute.xlu0 %2599 }
0x1df2   :  { %v2602_v51 = vmul.f32 %v4169_v33, %v2600_v50 }
0x1df4   :  { %2674 = vrot.lane.b32.xlu1 %v2602_v51, %s4227_s23 }
0x1e66   :  { %v2675_v52 = vpop.permute.xlu1 %2674 }
0x1e67   :  { %3819 = vmatmul.mubr.msk.f32.vlgmr.msra.gmra.mrb[28].mxu1 %vm54_vm2, %v2675_v52 }
0x1e68   :  { %4039 = vmatpush3.bf16.msra.mxu1 %v4290_v4  ;;  %3840 = vmatprep.mubr.msk.f32.mxu1 %vm4224_vm0, %v4225_v6 }
0x1e69   :  { %4040 = vmatprep.subr.bf16.mxu1 %v4223_v3 }
0x1e6c   :  { %4042 = vmatpush3.bf16.msra.mxu1 %v4301_v7  ;;  %v4748_v7 = vld [vmem:[%s4817_s6] ss:$0 sm:$0xff] }
0x1e6d   :  { %4043 = vmatprep.subr.bf16.mxu1 %v4223_v3 }
0x1e6f   :  { %3841 = vmatmul.mubr.msk.f32.vlgmr.msra.gmra.mrb[30].mxu1 %vm54_vm2, %v2675_v52 }
0x1e70   :  { %4045 = vmatpush3.bf16.msra.mxu1 %v4342_v30  ;;  %3856 = vmatprep.mubr.msk.f32.mxu1 %vm4224_vm0, %v4225_v6 }
0x1e71   :  { %4046 = vmatprep.subr.bf16.mxu1 %v4223_v3 }
0x1e74   :  { %4048 = vmatpush3.bf16.msra.mxu1 %v4362_v37 }
0x1e75   :  { %4055 = vmatprep.subr.bf16.mxu1 %v4223_v3 }
0x1f3a   :  { %v2744_v4 = vpop.f32.mrb[28].mxu1 }
0x1f3b   :  { %v2745_v53 = vadd.f32 %v2744_v4, %v2669_v23  ;;  %v3820_v54 = vpop.f32.mrb[29].mxu1 }
0x1f3d   :  { %v2748_v55 = vadd.f32 %v4748_v7, %v2745_v53 }
0x1f3f   :  { %4172 = vtanh.f32 %v2748_v55  ;;  %v3335_v57 = vmul.f32 -1.442695, %v2748_v55 }
0x1f41   :  { %4174 = vpow2.f32 %v3335_v57 }
0x1f42   :  { %v2918_v30 = vpop.f32.mrb[30].mxu1 }
0x1f43   :  { %v3842_v12 = vpop.f32.mrb[31].mxu1 }
0x1f49   :  { %v4173_v56 = vpop.eup %4172 }
0x1f4a   :  { %2758 = vrot.lane.b32.xlu0 %v4173_v56, %s4226_s22 }
0x1f4b   :  { %v4175_v37 = vpop.eup %4174 }
0x1f4c   :  { %v2752_v58 = vadd.f32 1.0, %v4175_v37 }
0x1f4e   :  { %4176 = vrcp.f32 %v2752_v58 }
0x1f58   :  { %v4177_v59 = vpop.eup %4176 }
0x1f59   :  { %v2756_v62 = vmul.f32 %v4177_v59, %v4683_v46 }
0x1fbc   :  { %v2759_v60 = vpop.permute.xlu0 %2758 }
0x1fbd   :  { %v2761_v61 = vmul.f32 %v4177_v59, %v2759_v60 }
0x1fbf   :  { %2763 = vrot.lane.b32.xlu1 %v2761_v61, %s4227_s23 }
0x2031   :  { %v2764_v63 = vpop.permute.xlu1 %2763 }
0x2032   :  { %v4754_v1 = vadd.f32 %v2764_v63, %v2756_v62 }
0x2034   :  { %4178 = vtanh.f32 %v4754_v1 }
0x203e   :  { %v4179_v2 = vpop.eup %4178 }
0x203f   :  { %2769 = vrot.lane.b32.xlu0 %v4179_v2, %s4226_s22 }
0x20b1   :  { %v2770_v5 = vpop.permute.xlu0 %2769 }
0x20b2   :  { %v2772_v9 = vmul.f32 %v4177_v59, %v2770_v5 }
0x20b4   :  { %2774 = vrot.lane.b32.xlu1 %v2772_v9, %s4227_s23 }
0x2126   :  { %v2775_v10 = vpop.permute.xlu1 %2774 }
0x2127   :  { %3830 = vmatmul.mubr.msk.f32.vlgmr.msra.gmra.mrb[34].mxu0 %vm54_vm2, %v2775_v10  ;;  %3857 = vmatmul.mubr.msk.f32.vlgmr.msra.gmra.mrb[32].mxu1 %vm54_vm2, %v2775_v10 }
0x2128   :  { %3844 = vmatpush3.msra.mxu0 %v4693_v20  ;;  %3845 = vmatprep.mubr.msk.f32.mxu0 %vm4224_vm0, %v4225_v6 }
0x2129   :  { %4049 = vmatprep.subr.bf16.mxu0 %v4223_v3  ;;  %4057 = vmatpush3.bf16.msra.mxu1 %v4502_v40 }
0x212a   :  { %4058 = vmatprep.subr.bf16.mxu1 %v4223_v3  ;;  %3878 = vmatprep.mubr.msk.f32.mxu1 %vm4224_vm0, %v4225_v6 }
0x212b   :  { %3846 = vmatmul.mubr.msk.f32.vlgmr.msra.gmra.mrb[36].mxu0 %vm128_vm1, %v3337_v11 }
0x212c   :  { %4051 = vmatpush3.bf16.msra.mxu0 %v4353_v34  ;;  %3867 = vmatprep.mubr.msk.f32.mxu0 %vm4224_vm0, %v4225_v6 }
0x212d   :  { %4052 = vmatprep.subr.bf16.mxu0 %v4223_v3  ;;  %4060 = vmatpush3.bf16.msra.mxu1 %v4508_v42 }
0x2130   :  { %4054 = vmatpush3.bf16.msra.mxu0 %v4366_v38 }
0x21fa   :  { %v2844_v13 = vpop.f32.mrb[34].mxu0  ;;  %v3086_v40 = vpop.f32.mrb[32].mxu1 }
0x21fb   :  { %v2845_v14 = vadd.f32 %v4540_v49, %v2844_v13  ;;  %v3831_v15 = vpop.f32.mrb[35].mxu0  ;;  %v3858_v0 = vpop.f32.mrb[33].mxu1 }
0x21fd   :  { %2849 = vst.msk [vmem:[#allocation2 + $0x8] sm:$0x3] %vm1180_vm3, %v2845_v14 }
0x21fe   :  { %v2991_v46 = vpop.f32.mrb[36].mxu0 }
0x21ff   :  { %v2992_v16 = vadd.f32 %v2991_v46, %v2918_v30  ;;  %v3847_v34 = vpop.f32.mrb[37].mxu0 }
0x2201   :  { %v2995_v17 = vadd.f32 %v4720_v8, %v2992_v16 }
0x2203   :  { %4180 = vtanh.f32 %v2995_v17  ;;  %v3340_v3 = vmul.f32 -1.442695, %v2995_v17 }
0x2205   :  { %4182 = vpow2.f32 %v3340_v3 }
0x220d   :  { %v4181_v6 = vpop.eup %4180 }
0x220e   :  { %3005 = vrot.lane.b32.xlu0 %v4181_v6, %s4226_s22 }
0x220f   :  { %v4183_v38 = vpop.eup %4182 }
0x2210   :  { %v2999_v42 = vadd.f32 1.0, %v4183_v38 }
0x2212   :  { %4184 = vrcp.f32 %v2999_v42 }
0x221c   :  { %v4185_v18 = vpop.eup %4184 }
0x221d   :  { %v3003_v21 = vmul.f32 %v4185_v18, %v4726_v47 }
0x2280   :  { %v3006_v19 = vpop.permute.xlu0 %3005 }
0x2281   :  { %v3008_v20 = vmul.f32 %v4185_v18, %v3006_v19 }
0x2283   :  { %3010 = vrot.lane.b32.xlu1 %v3008_v20, %s4227_s23 }
0x22f5   :  { %v3011_v22 = vpop.permute.xlu1 %3010 }
0x22f6   :  { %v3013_v23 = vadd.f32 %v3011_v22, %v3003_v21 }
0x22f8   :  { %4186 = vtanh.f32 %v3013_v23 }
0x2302   :  { %v4187_v24 = vpop.eup %4186 }
0x2303   :  { %3016 = vrot.lane.b32.xlu0 %v4187_v24, %s4226_s22 }
0x2375   :  { %v3017_v25 = vpop.permute.xlu0 %3016 }
0x2376   :  { %v3019_v26 = vmul.f32 %v4185_v18, %v3017_v25 }
0x2378   :  { %3091 = vrot.lane.b32.xlu1 %v3019_v26, %s4227_s23 }
0x23ea   :  { %v3092_v27 = vpop.permute.xlu1 %3091 }
0x23eb   :  { %3868 = vmatmul.mubr.msk.f32.vlgmr.msra.gmra.mrb[38].mxu0 %vm54_vm2, %v3092_v27 }
0x24be   :  { %v3161_v28 = vpop.f32.mrb[38].mxu0 }
0x24bf   :  { %v3162_v29 = vadd.f32 %v3161_v28, %v3086_v40  ;;  %v3869_v8 = vpop.f32.mrb[39].mxu0 }
0x24c1   :  { %v3165_v31 = vadd.f32 %v4748_v7, %v3162_v29 }
0x24c3   :  { %4188 = vtanh.f32 %v3165_v31  ;;  %v3343_v35 = vmul.f32 -1.442695, %v3165_v31 }
0x24c5   :  { %4190 = vpow2.f32 %v3343_v35 }
0x24cd   :  { %v4189_v32 = vpop.eup %4188 }
0x24ce   :  { %3175 = vrot.lane.b32.xlu0 %v4189_v32, %s4226_s22 }
0x24cf   :  { %v4191_v36 = vpop.eup %4190 }
0x24d0   :  { %v3169_v39 = vadd.f32 1.0, %v4191_v36 }
0x24d2   :  { %4192 = vrcp.f32 %v3169_v39 }
0x24dc   :  { %v4193_v33 = vpop.eup %4192 }
0x24dd   :  { %v3173_v44 = vmul.f32 %v4193_v33, %v4754_v1 }
0x2540   :  { %v3176_v41 = vpop.permute.xlu0 %3175 }
0x2541   :  { %v3178_v43 = vmul.f32 %v4193_v33, %v3176_v41 }
0x2543   :  { %3180 = vrot.lane.b32.xlu1 %v3178_v43, %s4227_s23 }
0x25b5   :  { %v3181_v45 = vpop.permute.xlu1 %3180 }
0x25b6   :  { %v3183_v47 = vadd.f32 %v3181_v45, %v3173_v44 }
0x25b8   :  { %4194 = vtanh.f32 %v3183_v47 }
0x25c2   :  { %v4195_v48 = vpop.eup %4194 }
0x25c3   :  { %3186 = vrot.lane.b32.xlu0 %v4195_v48, %s4226_s22 }
0x2635   :  { %v3187_v50 = vpop.permute.xlu0 %3186 }
0x2636   :  { %v3189_v51 = vmul.f32 %v4193_v33, %v3187_v50 }
0x2638   :  { %3191 = vrot.lane.b32.xlu1 %v3189_v51, %s4227_s23 }
0x26aa   :  { %v3192_v52 = vpop.permute.xlu1 %3191 }
0x26ab   :  { %3879 = vmatmul.mubr.msk.f32.vlgmr.msra.gmra.mrb[34].mxu1 %vm54_vm2, %v3192_v52 }
0x277e   :  { %v3261_v4 = vpop.f32.mrb[34].mxu1 }
0x277f   :  { %v3262_v53 = vadd.f32 %v4540_v49, %v3261_v4  ;;  %v3880_v54 = vpop.f32.mrb[35].mxu1 }
0x2781   :  { %3266 = vst.msk [vmem:[#allocation2 + $0xa] sm:$0x3] %vm1180_vm3, %v3262_v53 }
0x2782   :  { %4210 = shalt.err (!%p4207_p4)
}
0x2783   :  { %s4211_s26 = scalar_lea.hbm %s4820_s9, 192 }
0x2784   :  { %p4212_p5 = scmp.ne.s32.totalorder %s4820_s9, %s4211_s26  ;;  %p4215_p6 = scmp.lt.u32.totalorder %s4211_s26, %s4820_s9 }
0x2786   :  { %p4217_p7 = pnand %p4215_p6, %p4212_p5 }
0x2788   :  { %4220 = shalt.err (!%p4217_p7)
}
0x2789   :  { %s4229_s10 = smov 2  }
0x278a   :  { %3278 = dma.vmem_to_hbm [thread:$0]  %s3273_s21, 192, %s4820_s9, [#allocation3], %s4227_s23, %s4227_s23, %s4229_s10  }
0x278b   :  { %4221 = dma.done.wait [#allocation3], 192  }
0x278c   :  { %4222 = vsyncadd [#allocation3], 4294967104 }
0x278d   :  { %3282 = vsyncpa [#allocation3], 1 }

</bundles_post_ra>
